<compile_context>
chip_gen: v7x
topology: tpu7x:2x2x1
jax: 0.10.0
libtpu: 0.0.40
codegen_flags: <defaults>
</compile_context>

<pallas_src>
import functools
import math

import jax
import jax.numpy as jnp
from jax.experimental import pallas as pl
from jax.experimental.pallas import tpu as pltpu


# ------------------------- fused Pallas kernel -------------------------

def _make_dw_block_kernel(Ho, Wo, stride, has_residual):
    """conv_dw(3x3) + ReLU + conv_pw(1x1) [+ scale*residual] + ReLU, fused."""

    def kernel(xp_ref, wdw_ref, bdw_ref, wpw_ref, bpw_ref, scale_ref, o_ref):
        C = xp_ref.shape[-1]
        Cout = o_ref.shape[-1]

        # ---- depthwise 3x3 (input already halo-padded by 1): 9 shifted reads
        # of the resident VMEM tile, f32 multiply-accumulate on the VPU.
        acc = None
        k = 0
        for ki in range(3):
            for kj in range(3):
                if stride == 1:
                    tap = xp_ref[0, pl.ds(ki, Ho), pl.ds(kj, Wo), :]
                else:
                    tap = xp_ref[0, pl.ds(ki, Ho, stride), pl.ds(kj, Wo, stride), :]
                term = tap * wdw_ref[k]                       # (Ho, Wo, C) * (1, C)
                if acc is None:
                    acc = term + bdw_ref[...]                 # bias folded into tap 0
                else:
                    acc = acc + term
                k += 1
        h = jnp.maximum(acc, 0.0)                             # act1 (ReLU), f32

        # ---- pointwise 1x1 conv on the MXU: bf16 operands, f32 accumulate.
        h2d = h.reshape(Ho * Wo, C).astype(wpw_ref.dtype)
        y = jnp.dot(h2d, wpw_ref[...], preferred_element_type=jnp.float32)
        y = y + bpw_ref[...]

        if has_residual:
            # residual == interior of the padded input tile already in VMEM
            r = xp_ref[0, pl.ds(1, Ho), pl.ds(1, Wo), :].reshape(Ho * Wo, C)
            y = y + r * scale_ref[0]                          # Scale() from SMEM

        o_ref[0] = jnp.maximum(y, 0.0).reshape(Ho, Wo, Cout)  # act2 (ReLU)

    return kernel


# ------------------------- pallas_call wrapper -------------------------

def depthwise_conv_forward(x_nchw, kparams, *, stride=1):
    """PyTorch DepthwiseConv.forward. x_nchw: (B, C, H, W) f32 -> (B, Cout, Ho, Wo)."""
    B, C, H, W = x_nchw.shape
    wdw9, bdw = kparams["dw_w"], kparams["dw_b"]
    wpw, bpw = kparams["pw_w"], kparams["pw_b"]
    scale = kparams["scale"]
    Cout = wpw.shape[1]
    has_residual = (stride == 1) and (C == Cout)

    Ho = (H + 2 - 3) // stride + 1
    Wo = (W + 2 - 3) // stride + 1
    Hp, Wp = H + 2, W + 2

    # NCHW (PyTorch) -> NHWC (channels on the lane axis) + halo pad for the 3x3 window.
    x = jnp.transpose(x_nchw, (0, 2, 3, 1)).astype(jnp.float32)
    xp = jnp.pad(x, ((0, 0), (1, 1), (1, 1), (0, 0)))

    kernel = _make_dw_block_kernel(Ho, Wo, stride, has_residual)

    # Grid over batch, "parallel" so v7x can shard grid steps across its 2 TCs and
    # Pallas double-buffers the per-image DMAs. Weight blocks map to block (0, ...)
    # for every step, so they stay resident in VMEM across the grid.
    # (For large H one would add a row-tile grid axis with a halo; not needed here.)
    out_nhwc = pl.pallas_call(
        kernel,
        out_shape=jax.ShapeDtypeStruct((B, Ho, Wo, Cout), jnp.float32),
        grid=(B,),
        in_specs=[
            pl.BlockSpec((1, Hp, Wp, C), lambda b: (b, 0, 0, 0)),   # padded input tile
            pl.BlockSpec((9, 1, C), lambda b: (0, 0, 0)),           # dw weights (tap-major)
            pl.BlockSpec((1, C), lambda b: (0, 0)),                 # dw bias
            pl.BlockSpec((C, Cout), lambda b: (0, 0)),              # pw weight (bf16)
            pl.BlockSpec((1, Cout), lambda b: (0, 0)),              # pw bias
            pl.BlockSpec(memory_space=pltpu.MemorySpace.SMEM),      # Scale() scalar
        ],
        out_specs=pl.BlockSpec((1, Ho, Wo, Cout), lambda b: (b, 0, 0, 0)),
        compiler_params=pltpu.CompilerParams(
            dimension_semantics=("parallel",)),
    )(xp, wdw9, bdw, wpw, bpw, scale)

    # back to the PyTorch NCHW convention
    return jnp.transpose(out_nhwc, (0, 3, 1, 2))


# ------------------------- params (PyTorch layout -> kernel layout) -------------------------

def init_params(key, in_chs, out_chs):
    k1, k2, k3, k4 = jax.random.split(key, 4)
    lim_dw = math.sqrt(1.0 / 9.0)
    w_dw = jax.random.uniform(k1, (in_chs, 1, 3, 3), jnp.float32, -lim_dw, lim_dw)
    b_dw = jax.random.uniform(k2, (in_chs,), jnp.float32, -lim_dw, lim_dw)
    lim_pw = math.sqrt(1.0 / in_chs)
    w_pw = jax.random.uniform(k3, (out_chs, in_chs, 1, 1), jnp.float32, -lim_pw, lim_pw)
    b_pw = jax.random.uniform(k4, (out_chs,), jnp.float32, -lim_pw, lim_pw)
    scale = jnp.ones((1,), jnp.float32)           # Scale() default (requires_grad=False)

    torch_params = dict(dw_w=w_dw, dw_b=b_dw, pw_w=w_pw, pw_b=b_pw, scale=scale)
    kernel_params = dict(
        # (C,1,3,3) -> (ki*3+kj, 1, C): matches the kernel's tap loop order.
        dw_w=jnp.transpose(w_dw[:, 0], (1, 2, 0)).reshape(9, 1, in_chs),
        dw_b=b_dw.reshape(1, in_chs),
        # (Cout,Cin,1,1) -> (Cin,Cout), stored bf16 for the MXU (f32 accumulate in-kernel).
        pw_w=jnp.transpose(w_pw[:, :, 0, 0], (1, 0)).astype(jnp.bfloat16),
        pw_b=b_pw.reshape(1, out_chs),
        scale=scale,
    )
    return torch_params, kernel_params


# ------------------------- pure-JAX reference -------------------------

def reference_forward(x_nchw, tp, *, stride=1):
    C = x_nchw.shape[1]
    Cout = tp["pw_w"].shape[0]
    has_residual = (stride == 1) and (C == Cout)
    y = jax.lax.conv_general_dilated(
        x_nchw, tp["dw_w"], (stride, stride), ((1, 1), (1, 1)),
        dimension_numbers=("NCHW", "OIHW", "NCHW"), feature_group_count=C)
    y = jnp.maximum(y + tp["dw_b"][None, :, None, None], 0.0)
    z = jax.lax.conv_general_dilated(
        y, tp["pw_w"], (1, 1), "VALID",
        dimension_numbers=("NCHW", "OIHW", "NCHW"))
    z = z + tp["pw_b"][None, :, None, None]
    if has_residual:
        z = z + x_nchw * tp["scale"][0]
    return jnp.maximum(z, 0.0)


# ------------------------- main -------------------------

if __name__ == "__main__":
    key = jax.random.PRNGKey(0)
    kx, kpa, kpb = jax.random.split(key, 3)

    B, C, H, W = 2, 4, 16, 16
    x = jax.random.normal(kx, (B, C, H, W), jnp.float32)

    fwd = jax.jit(functools.partial(depthwise_conv_forward, stride=1))

    # Config 1: in_chs == out_chs, stride 1 -> residual + Scale() path exercised.
    tp1, kp1 = init_params(kpa, C, C)
    out1 = jax.block_until_ready(fwd(x, kp1))
    ref1 = reference_forward(x, tp1, stride=1)
    assert out1.shape == (B, C, H, W), out1.shape
    assert bool(jnp.all(jnp.isfinite(out1)))
    assert bool(jnp.allclose(out1, ref1, atol=5e-2, rtol=5e-2)), \
        float(jnp.max(jnp.abs(out1 - ref1)))

    # Config 2: channel expansion (4 -> 8), no residual.
    tp2, kp2 = init_params(kpb, C, 8)
    out2 = jax.block_until_ready(fwd(x, kp2))
    ref2 = reference_forward(x, tp2, stride=1)
    assert out2.shape == (B, 8, H, W), out2.shape
    assert bool(jnp.all(jnp.isfinite(out2)))
    assert bool(jnp.allclose(out2, ref2, atol=5e-2, rtol=5e-2)), \
        float(jnp.max(jnp.abs(out2 - ref2)))

    print("KERNEL_OK")
</pallas_src>

<mosaic_0001>
module attributes {stable_mosaic.version = 11 : i64} {
  func.func @kernel(%arg0: i32, %arg1: memref<1x18x18x4xf32, #tpu.memory_space<vmem>>, %arg2: memref<9x1x4xf32, #tpu.memory_space<vmem>>, %arg3: memref<1x4xf32, #tpu.memory_space<vmem>>, %arg4: memref<4x4xbf16, #tpu.memory_space<vmem>>, %arg5: memref<1x4xf32, #tpu.memory_space<vmem>>, %arg6: memref<1xf32, #tpu.memory_space<smem>>, %arg7: memref<1x16x16x4xf32, #tpu.memory_space<vmem>>) attributes {dimension_semantics = [#tpu.dimension_semantics<parallel>], iteration_bounds = array<i64: 2>, scalar_prefetch = 0 : i64, scratch_operands = 0 : i64, tpu.core_type = #tpu.core_type<tc>, window_params = [{transform_indices = @transform_0, window_bounds = array<i64: 1, 18, 18, 4>}, {pipeline_mode = #tpu.pipeline_mode<synchronous>, transform_indices = @transform_1, window_bounds = array<i64: 9, 1, 4>}, {pipeline_mode = #tpu.pipeline_mode<synchronous>, transform_indices = @transform_2, window_bounds = array<i64: 1, 4>}, {pipeline_mode = #tpu.pipeline_mode<synchronous>, transform_indices = @transform_3, window_bounds = array<i64: 4, 4>}, {pipeline_mode = #tpu.pipeline_mode<synchronous>, transform_indices = @transform_4, window_bounds = array<i64: 1, 4>}, {transform_indices = @transform_5, window_bounds = array<i64: 1>}, {transform_indices = @transform_6, window_bounds = array<i64: 1, 16, 16, 4>}]} {
    %c0 = arith.constant 0 : index
    %c0_0 = arith.constant 0 : index
    %c0_1 = arith.constant 0 : index
    %c0_2 = arith.constant 0 : index
    %0 = vector.load %arg1[%c0, %c0_0, %c0_1, %c0_2] : memref<1x18x18x4xf32, #tpu.memory_space<vmem>>, vector<1x16x16x4xf32>
    %1 = vector.shape_cast %0 : vector<1x16x16x4xf32> to vector<16x16x4xf32>
    %c0_3 = arith.constant 0 : index
    %c0_4 = arith.constant 0 : index
    %c0_5 = arith.constant 0 : index
    %2 = vector.load %arg2[%c0_3, %c0_4, %c0_5] : memref<9x1x4xf32, #tpu.memory_space<vmem>>, vector<1x1x4xf32>
    %3 = vector.shape_cast %2 : vector<1x1x4xf32> to vector<1x4xf32>
    %4 = vector.shape_cast %3 : vector<1x4xf32> to vector<1x1x4xf32>
    %5 = vector.broadcast %4 : vector<1x1x4xf32> to vector<16x16x4xf32>
    %6 = arith.mulf %1, %5 : vector<16x16x4xf32>
    %c0_6 = arith.constant 0 : index
    %c0_7 = arith.constant 0 : index
    %7 = vector.load %arg3[%c0_6, %c0_7] : memref<1x4xf32, #tpu.memory_space<vmem>>, vector<1x4xf32>
    %8 = vector.shape_cast %7 : vector<1x4xf32> to vector<1x1x4xf32>
    %9 = vector.broadcast %8 : vector<1x1x4xf32> to vector<16x16x4xf32>
    %10 = arith.addf %6, %9 : vector<16x16x4xf32>
    %c0_8 = arith.constant 0 : index
    %c0_9 = arith.constant 0 : index
    %c1 = arith.constant 1 : index
    %c0_10 = arith.constant 0 : index
    %11 = vector.load %arg1[%c0_8, %c0_9, %c1, %c0_10] : memref<1x18x18x4xf32, #tpu.memory_space<vmem>>, vector<1x16x16x4xf32>
    %12 = vector.shape_cast %11 : vector<1x16x16x4xf32> to vector<16x16x4xf32>
    %c1_11 = arith.constant 1 : index
    %c0_12 = arith.constant 0 : index
    %c0_13 = arith.constant 0 : index
    %13 = vector.load %arg2[%c1_11, %c0_12, %c0_13] : memref<9x1x4xf32, #tpu.memory_space<vmem>>, vector<1x1x4xf32>
    %14 = vector.shape_cast %13 : vector<1x1x4xf32> to vector<1x4xf32>
    %15 = vector.shape_cast %14 : vector<1x4xf32> to vector<1x1x4xf32>
    %16 = vector.broadcast %15 : vector<1x1x4xf32> to vector<16x16x4xf32>
    %17 = arith.mulf %12, %16 : vector<16x16x4xf32>
    %18 = arith.addf %10, %17 : vector<16x16x4xf32>
    %c0_14 = arith.constant 0 : index
    %c0_15 = arith.constant 0 : index
    %c2 = arith.constant 2 : index
    %c0_16 = arith.constant 0 : index
    %19 = vector.load %arg1[%c0_14, %c0_15, %c2, %c0_16] : memref<1x18x18x4xf32, #tpu.memory_space<vmem>>, vector<1x16x16x4xf32>
    %20 = vector.shape_cast %19 : vector<1x16x16x4xf32> to vector<16x16x4xf32>
    %c2_17 = arith.constant 2 : index
    %c0_18 = arith.constant 0 : index
    %c0_19 = arith.constant 0 : index
    %21 = vector.load %arg2[%c2_17, %c0_18, %c0_19] : memref<9x1x4xf32, #tpu.memory_space<vmem>>, vector<1x1x4xf32>
    %22 = vector.shape_cast %21 : vector<1x1x4xf32> to vector<1x4xf32>
    %23 = vector.shape_cast %22 : vector<1x4xf32> to vector<1x1x4xf32>
    %24 = vector.broadcast %23 : vector<1x1x4xf32> to vector<16x16x4xf32>
    %25 = arith.mulf %20, %24 : vector<16x16x4xf32>
    %26 = arith.addf %18, %25 : vector<16x16x4xf32>
    %c0_20 = arith.constant 0 : index
    %c1_21 = arith.constant 1 : index
    %c0_22 = arith.constant 0 : index
    %c0_23 = arith.constant 0 : index
    %27 = vector.load %arg1[%c0_20, %c1_21, %c0_22, %c0_23] : memref<1x18x18x4xf32, #tpu.memory_space<vmem>>, vector<1x16x16x4xf32>
    %28 = vector.shape_cast %27 : vector<1x16x16x4xf32> to vector<16x16x4xf32>
    %c3 = arith.constant 3 : index
    %c0_24 = arith.constant 0 : index
    %c0_25 = arith.constant 0 : index
    %29 = vector.load %arg2[%c3, %c0_24, %c0_25] : memref<9x1x4xf32, #tpu.memory_space<vmem>>, vector<1x1x4xf32>
    %30 = vector.shape_cast %29 : vector<1x1x4xf32> to vector<1x4xf32>
    %31 = vector.shape_cast %30 : vector<1x4xf32> to vector<1x1x4xf32>
    %32 = vector.broadcast %31 : vector<1x1x4xf32> to vector<16x16x4xf32>
    %33 = arith.mulf %28, %32 : vector<16x16x4xf32>
    %34 = arith.addf %26, %33 : vector<16x16x4xf32>
    %c0_26 = arith.constant 0 : index
    %c1_27 = arith.constant 1 : index
    %c1_28 = arith.constant 1 : index
    %c0_29 = arith.constant 0 : index
    %35 = vector.load %arg1[%c0_26, %c1_27, %c1_28, %c0_29] : memref<1x18x18x4xf32, #tpu.memory_space<vmem>>, vector<1x16x16x4xf32>
    %36 = vector.shape_cast %35 : vector<1x16x16x4xf32> to vector<16x16x4xf32>
    %c4 = arith.constant 4 : index
    %c0_30 = arith.constant 0 : index
    %c0_31 = arith.constant 0 : index
    %37 = vector.load %arg2[%c4, %c0_30, %c0_31] : memref<9x1x4xf32, #tpu.memory_space<vmem>>, vector<1x1x4xf32>
    %38 = vector.shape_cast %37 : vector<1x1x4xf32> to vector<1x4xf32>
    %39 = vector.shape_cast %38 : vector<1x4xf32> to vector<1x1x4xf32>
    %40 = vector.broadcast %39 : vector<1x1x4xf32> to vector<16x16x4xf32>
    %41 = arith.mulf %36, %40 : vector<16x16x4xf32>
    %42 = arith.addf %34, %41 : vector<16x16x4xf32>
    %c0_32 = arith.constant 0 : index
    %c1_33 = arith.constant 1 : index
    %c2_34 = arith.constant 2 : index
    %c0_35 = arith.constant 0 : index
    %43 = vector.load %arg1[%c0_32, %c1_33, %c2_34, %c0_35] : memref<1x18x18x4xf32, #tpu.memory_space<vmem>>, vector<1x16x16x4xf32>
    %44 = vector.shape_cast %43 : vector<1x16x16x4xf32> to vector<16x16x4xf32>
    %c5 = arith.constant 5 : index
    %c0_36 = arith.constant 0 : index
    %c0_37 = arith.constant 0 : index
    %45 = vector.load %arg2[%c5, %c0_36, %c0_37] : memref<9x1x4xf32, #tpu.memory_space<vmem>>, vector<1x1x4xf32>
    %46 = vector.shape_cast %45 : vector<1x1x4xf32> to vector<1x4xf32>
    %47 = vector.shape_cast %46 : vector<1x4xf32> to vector<1x1x4xf32>
    %48 = vector.broadcast %47 : vector<1x1x4xf32> to vector<16x16x4xf32>
    %49 = arith.mulf %44, %48 : vector<16x16x4xf32>
    %50 = arith.addf %42, %49 : vector<16x16x4xf32>
    %c0_38 = arith.constant 0 : index
    %c2_39 = arith.constant 2 : index
    %c0_40 = arith.constant 0 : index
    %c0_41 = arith.constant 0 : index
    %51 = vector.load %arg1[%c0_38, %c2_39, %c0_40, %c0_41] : memref<1x18x18x4xf32, #tpu.memory_space<vmem>>, vector<1x16x16x4xf32>
    %52 = vector.shape_cast %51 : vector<1x16x16x4xf32> to vector<16x16x4xf32>
    %c6 = arith.constant 6 : index
    %c0_42 = arith.constant 0 : index
    %c0_43 = arith.constant 0 : index
    %53 = vector.load %arg2[%c6, %c0_42, %c0_43] : memref<9x1x4xf32, #tpu.memory_space<vmem>>, vector<1x1x4xf32>
    %54 = vector.shape_cast %53 : vector<1x1x4xf32> to vector<1x4xf32>
    %55 = vector.shape_cast %54 : vector<1x4xf32> to vector<1x1x4xf32>
    %56 = vector.broadcast %55 : vector<1x1x4xf32> to vector<16x16x4xf32>
    %57 = arith.mulf %52, %56 : vector<16x16x4xf32>
    %58 = arith.addf %50, %57 : vector<16x16x4xf32>
    %c0_44 = arith.constant 0 : index
    %c2_45 = arith.constant 2 : index
    %c1_46 = arith.constant 1 : index
    %c0_47 = arith.constant 0 : index
    %59 = vector.load %arg1[%c0_44, %c2_45, %c1_46, %c0_47] : memref<1x18x18x4xf32, #tpu.memory_space<vmem>>, vector<1x16x16x4xf32>
    %60 = vector.shape_cast %59 : vector<1x16x16x4xf32> to vector<16x16x4xf32>
    %c7 = arith.constant 7 : index
    %c0_48 = arith.constant 0 : index
    %c0_49 = arith.constant 0 : index
    %61 = vector.load %arg2[%c7, %c0_48, %c0_49] : memref<9x1x4xf32, #tpu.memory_space<vmem>>, vector<1x1x4xf32>
    %62 = vector.shape_cast %61 : vector<1x1x4xf32> to vector<1x4xf32>
    %63 = vector.shape_cast %62 : vector<1x4xf32> to vector<1x1x4xf32>
    %64 = vector.broadcast %63 : vector<1x1x4xf32> to vector<16x16x4xf32>
    %65 = arith.mulf %60, %64 : vector<16x16x4xf32>
    %66 = arith.addf %58, %65 : vector<16x16x4xf32>
    %c0_50 = arith.constant 0 : index
    %c2_51 = arith.constant 2 : index
    %c2_52 = arith.constant 2 : index
    %c0_53 = arith.constant 0 : index
    %67 = vector.load %arg1[%c0_50, %c2_51, %c2_52, %c0_53] : memref<1x18x18x4xf32, #tpu.memory_space<vmem>>, vector<1x16x16x4xf32>
    %68 = vector.shape_cast %67 : vector<1x16x16x4xf32> to vector<16x16x4xf32>
    %c8 = arith.constant 8 : index
    %c0_54 = arith.constant 0 : index
    %c0_55 = arith.constant 0 : index
    %69 = vector.load %arg2[%c8, %c0_54, %c0_55] : memref<9x1x4xf32, #tpu.memory_space<vmem>>, vector<1x1x4xf32>
    %70 = vector.shape_cast %69 : vector<1x1x4xf32> to vector<1x4xf32>
    %71 = vector.shape_cast %70 : vector<1x4xf32> to vector<1x1x4xf32>
    %72 = vector.broadcast %71 : vector<1x1x4xf32> to vector<16x16x4xf32>
    %73 = arith.mulf %68, %72 : vector<16x16x4xf32>
    %74 = arith.addf %66, %73 : vector<16x16x4xf32>
    %cst = arith.constant 0.000000e+00 : f32
    %75 = vector.broadcast %cst : f32 to vector<16x16x4xf32>
    %76 = arith.maximumf %74, %75 : vector<16x16x4xf32>
    %77 = vector.shape_cast %76 : vector<16x16x4xf32> to vector<256x4xf32>
    %78 = arith.truncf %77 : vector<256x4xf32> to vector<256x4xbf16>
    %c0_56 = arith.constant 0 : index
    %c0_57 = arith.constant 0 : index
    %79 = vector.load %arg4[%c0_56, %c0_57] : memref<4x4xbf16, #tpu.memory_space<vmem>>, vector<4x4xbf16>
    %cst_58 = arith.constant dense<0.000000e+00> : vector<256x4xf32>
    %80 = tpu.matmul %78, %79, %cst_58 {dimension_numbers = #tpu.dot_dimension_numbers<[1], [0], [0], [1], [0, 0, 1, 1], [], []>} : vector<256x4xbf16>, vector<4x4xbf16>, vector<256x4xf32> -> vector<256x4xf32>
    %c0_59 = arith.constant 0 : index
    %c0_60 = arith.constant 0 : index
    %81 = vector.load %arg5[%c0_59, %c0_60] : memref<1x4xf32, #tpu.memory_space<vmem>>, vector<1x4xf32>
    %82 = vector.broadcast %81 : vector<1x4xf32> to vector<256x4xf32>
    %83 = arith.addf %80, %82 : vector<256x4xf32>
    %c0_61 = arith.constant 0 : index
    %c1_62 = arith.constant 1 : index
    %c1_63 = arith.constant 1 : index
    %c0_64 = arith.constant 0 : index
    %84 = vector.load %arg1[%c0_61, %c1_62, %c1_63, %c0_64] : memref<1x18x18x4xf32, #tpu.memory_space<vmem>>, vector<1x16x16x4xf32>
    %85 = vector.shape_cast %84 : vector<1x16x16x4xf32> to vector<16x16x4xf32>
    %86 = vector.shape_cast %85 : vector<16x16x4xf32> to vector<256x4xf32>
    %c0_65 = arith.constant 0 : index
    %87 = memref.load %arg6[%c0_65] : memref<1xf32, #tpu.memory_space<smem>>
    %88 = vector.broadcast %87 : f32 to vector<256x4xf32>
    %89 = arith.mulf %86, %88 : vector<256x4xf32>
    %90 = arith.addf %83, %89 : vector<256x4xf32>
    %cst_66 = arith.constant 0.000000e+00 : f32
    %91 = vector.broadcast %cst_66 : f32 to vector<256x4xf32>
    %92 = arith.maximumf %90, %91 : vector<256x4xf32>
    %93 = vector.shape_cast %92 : vector<256x4xf32> to vector<16x16x4xf32>
    %c0_67 = arith.constant 0 : index
    %c0_68 = arith.constant 0 : index
    %c0_69 = arith.constant 0 : index
    %c0_70 = arith.constant 0 : index
    %94 = vector.load %arg7[%c0_67, %c0_68, %c0_69, %c0_70] : memref<1x16x16x4xf32, #tpu.memory_space<vmem>>, vector<1x16x16x4xf32>
    %95 = vector.shape_cast %94 : vector<1x16x16x4xf32> to vector<16x16x4xf32>
    %96 = vector.shape_cast %93 : vector<16x16x4xf32> to vector<1x16x16x4xf32>
    tpu.vector_store %arg7[%c0_67, %c0_68, %c0_69, %c0_70], %96 {strides = array<i32>} : memref<1x16x16x4xf32, #tpu.memory_space<vmem>>, vector<1x16x16x4xf32>,
    return
  }
  func.func @transform_0(%arg0: i32) -> (i32, i32, i32, i32) {
    %c0_i32 = arith.constant 0 : i32
    %c0_i32_0 = arith.constant 0 : i32
    %c0_i32_1 = arith.constant 0 : i32
    %c0_i32_2 = arith.constant 0 : i32
    return %arg0, %c0_i32, %c0_i32_0, %c0_i32_1 : i32, i32, i32, i32
  }
  func.func @transform_1(%arg0: i32) -> (i32, i32, i32) {
    %c0_i32 = arith.constant 0 : i32
    %c0_i32_0 = arith.constant 0 : i32
    %c0_i32_1 = arith.constant 0 : i32
    %c0_i32_2 = arith.constant 0 : i32
    return %c0_i32, %c0_i32_0, %c0_i32_1 : i32, i32, i32
  }
  func.func @transform_2(%arg0: i32) -> (i32, i32) {
    %c0_i32 = arith.constant 0 : i32
    %c0_i32_0 = arith.constant 0 : i32
    %c0_i32_1 = arith.constant 0 : i32
    return %c0_i32, %c0_i32_0 : i32, i32
  }
  func.func @transform_3(%arg0: i32) -> (i32, i32) {
    %c0_i32 = arith.constant 0 : i32
    %c0_i32_0 = arith.constant 0 : i32
    %c0_i32_1 = arith.constant 0 : i32
    return %c0_i32, %c0_i32_0 : i32, i32
  }
  func.func @transform_4(%arg0: i32) -> (i32, i32) {
    %c0_i32 = arith.constant 0 : i32
    %c0_i32_0 = arith.constant 0 : i32
    %c0_i32_1 = arith.constant 0 : i32
    return %c0_i32, %c0_i32_0 : i32, i32
  }
  func.func @transform_5(%arg0: i32) -> i32 {
    %c0_i32 = arith.constant 0 : i32
    %c0_i32_0 = arith.constant 0 : i32
    return %c0_i32 : i32
  }
  func.func @transform_6(%arg0: i32) -> (i32, i32, i32, i32) {
    %c0_i32 = arith.constant 0 : i32
    %c0_i32_0 = arith.constant 0 : i32
    %c0_i32_1 = arith.constant 0 : i32
    %c0_i32_2 = arith.constant 0 : i32
    return %arg0, %c0_i32, %c0_i32_0, %c0_i32_1 : i32, i32, i32, i32
  }
}

</mosaic_0001>

<bundles_post_ra>
// kernel: depthwise_conv_forward.1
= control target key start
LH: loop header
LB: loop body
LE: loop exit
PB: predicated region body
PF: predicated region fallthrough
CT: control target
= control target key end

     0   :  { %s2031_s23 = smov 0   ;;  %s3250_s0 = inlined_call_operand.vmem [shape: f32[2,18,18,4], index: 0, kind: input, shape index: {}]   ;;  %s3251_s1 = inlined_call_operand.vmem [shape: f32[9,1,4], index: 1, kind: input, shape index: {}]   ;;  %s3252_s2 = inlined_call_operand.vmem [shape: f32[1,4], index: 2, kind: input, shape index: {}]   ;;  %s3253_s3 = inlined_call_operand.vmem [shape: bf16[4,4], index: 3, kind: input, shape index: {}]   ;;  %s3254_s4 = inlined_call_operand.vmem [shape: f32[1,4], index: 4, kind: input, shape index: {}]   ;;  %s3255_s5 = inlined_call_operand.<no memory space> [shape: f32[1], index: 5, kind: input, shape index: {}]   ;;  %s3256_s6 = inlined_call_operand.vmem [shape: f32[2,16,16,4], index: 6, kind: output, shape index: {}]  }
   0x1   :  { %11 = sst [smem:[#allocation2]] %s3255_s5 }
   0x2 LB: > { %s1653_s24 = sadd.s32 4294967295, %s1991_s23   ;;  %p1657_p0 = scmp.ge.s32.totalorder %s1991_s23, 1  ;;  %s1991_s23 = sphi %s2031_s23, %s17_s23  }
   0x3   : > { %p213_p1 = scmp.lt.s32.totalorder %s1991_s23, 3 }
   0x5   : > { %p214_p2 = pnand %p1657_p0, %p213_p1 }
   0x7   : > { %217 = sbr.rel (%p214_p2) target bundleno = 410 (0x19a), region = 44 }
   0xe   : > { %v1246_v0 = vld [vmem:[%s3253_s3] sm:$0x3]  ;;  %vm1303_vm0 = vcmask 1041408   ;;  %p243_p3 = scmp.lt.s32.totalorder %s1653_s24, 1  ;;  %v2063_v5 = vld [vmem:[%s3251_s1 + $0x2] ss:$0 sm:$0xff] }
   0xf   : > { %1944 = vmatprep.subr.msk.bf16.mxu0 %vm1303_vm0, %v1246_v0  ;;  %1945 = vmatprep.subr.msk.bf16.mxu1 %vm1303_vm0, %v1246_v0  ;;  %v1305_v1 = vsel %vm1303_vm0, %v1246_v0, 0  ;;  %v2048_v2 = vld [vmem:[%s3251_s1] ss:$0 sm:$0xff]  ;;  %v2058_v4 = vld [vmem:[%s3251_s1 + $0x1] ss:$0 sm:$0xff]  ;;  %vm1254_vm1 = vcmask 31744  }
  0x10   : > { %1909 = vmatpush3.bf16.msra.mxu0 %v1305_v1  ;;  %1943 = vmatpush3.bf16.msra.mxu1 %v1305_v1  ;;  %s3266_s24 = smov (!%p243_p3, %s1653_s24), 1  ;;  %v2053_v3 = vld [vmem:[%s3252_s2] ss:$0 sm:$0xff]  ;;  %v2073_v6 = vld [vmem:[%s3251_s1 + $0x3] ss:$0 sm:$0xff]  ;;  %s1468_s26 = sld [smem:[#allocation2]] }
  0x11   : > { %s1946_s5 = smul.u32 432, %s3266_s24  ;;  %v2078_v7 = vld [vmem:[%s3251_s1 + $0x4] ss:$0 sm:$0xff]  ;;  %v2083_v8 = vld [vmem:[%s3251_s1 + $0x5] ss:$0 sm:$0xff]  ;;  %s1890_s28 = sshll.u32 %s3266_s24, 8 }
  0x12   : > { %v2091_v12 = vld [vmem:[%s3251_s1 + $0x6] ss:$0 sm:$0xff]  ;;  %v2102_v19 = vld [vmem:[%s3251_s1 + $0x7] ss:$0 sm:$0xff]  ;;  %v2107_v20 = vld [vmem:[%s3251_s1 + $0x8] ss:$0 sm:$0xff]  ;;  %s3096_s24 = scalar_lea.vmem %s3256_s6, %s1890_s28 }
  0x13   : > { %s2068_s13 = scalar_lea.vmem %s3250_s0, %s1946_s5 }
  0x14   : > { %v254_v9 = vld [vmem:[%s2068_s13] sm:$0xff]  ;;  %v255_v10 = vld [vmem:[%s2068_s13 + $0x8] sm:$0xff]  ;;  %v2113_v24 = vld [vmem:[%s2068_s13 + $0x18] sm:$0xff] }
  0x15   : > { %v364_v11 = vld [vmem:[%s2068_s13 + $0x1] sm:$0xff]  ;;  %v293_v13 = vmul.f32 %v2048_v2, %v254_v9  ;;  %v294_v14 = vmul.f32 %v2048_v2, %v255_v10  ;;  %v365_v15 = vld [vmem:[%s2068_s13 + $0x9] sm:$0xff]  ;;  %v2119_v26 = vld [vmem:[%s2068_s13 + $0x19] sm:$0xff]  ;;  %v613_v29 = vmul.f32 %v2073_v6, %v2113_v24 }
  0x16   : > { %v404_v16 = vmul.f32 %v2058_v4, %v364_v11  ;;  %v468_v17 = vld [vmem:[%s2068_s13 + $0x2] sm:$0xff]  ;;  %v469_v18 = vld [vmem:[%s2068_s13 + $0xa] sm:$0xff]  ;;  %v405_v21 = vmul.f32 %v2058_v4, %v365_v15  ;;  %v2131_v32 = vld [vmem:[%s2068_s13 + $0x1a] sm:$0xff]  ;;  %v717_v34 = vmul.f32 %v2078_v7, %v2119_v26 }
  0x17   : > { %v508_v22 = vmul.f32 %v2063_v5, %v468_v17  ;;  %v509_v23 = vmul.f32 %v2063_v5, %v469_v18  ;;  %v2116_v25 = vld [vmem:[%s2068_s13 + $0x20] sm:$0xff]  ;;  %v332_v27 = vadd.f32 %v2053_v3, %v293_v13  ;;  %v333_v28 = vadd.f32 %v2053_v3, %v294_v14  ;;  %v2145_v38 = vld [vmem:[%s2068_s13 + $0x30] sm:$0xff]  ;;  %v2148_v39 = vld [vmem:[%s2068_s13 + $0x38] sm:$0xff] }
  0x18   : > { %v614_v30 = vmul.f32 %v2073_v6, %v2116_v25  ;;  %v2128_v31 = vld [vmem:[%s2068_s13 + $0x21] sm:$0xff]  ;;  %v821_v36 = vmul.f32 %v2083_v8, %v2131_v32  ;;  %v2151_v40 = vld [vmem:[%s2068_s13 + $0x31] sm:$0xff]  ;;  %v926_v43 = vmul.f32 %v2091_v12, %v2145_v38  ;;  %v927_v44 = vmul.f32 %v2091_v12, %v2148_v39  ;;  %v2158_v45 = vld [vmem:[%s2068_s13 + $0x39] sm:$0xff] }
  0x19   : > { %v2134_v33 = vld [vmem:[%s2068_s13 + $0x22] sm:$0xff]  ;;  %v718_v35 = vmul.f32 %v2078_v7, %v2128_v31  ;;  %v436_v41 = vadd.f32 %v404_v16, %v332_v27  ;;  %v437_v42 = vadd.f32 %v405_v21, %v333_v28  ;;  %v2161_v46 = vld [vmem:[%s2068_s13 + $0x32] sm:$0xff]  ;;  %v2164_v47 = vld [vmem:[%s2068_s13 + $0x3a] sm:$0xff]  ;;  %v2168_v48 = vmul.f32 %v2102_v19, %v2151_v40 }
  0x1a   : > { %v822_v37 = vmul.f32 %v2083_v8, %v2134_v33  ;;  %v2172_v49 = vmul.f32 %v2102_v19, %v2158_v45  ;;  %v2176_v50 = vmul.f32 %v2107_v20, %v2161_v46  ;;  %v2180_v51 = vmul.f32 %v2107_v20, %v2164_v47  ;;  %v270_v52 = vld [vmem:[%s2068_s13 + $0xc0] sm:$0xff]  ;;  %v271_v53 = vld [vmem:[%s2068_s13 + $0xc8] sm:$0xff]  ;;  %v2195_v9 = vld [vmem:[%s2068_s13 + $0xd8] sm:$0xff] }
  0x1b   : > { %v380_v54 = vld [vmem:[%s2068_s13 + $0xc1] sm:$0xff]  ;;  %v540_v55 = vadd.f32 %v508_v22, %v436_v41  ;;  %v541_v56 = vadd.f32 %v509_v23, %v437_v42  ;;  %v309_v57 = vmul.f32 %v2048_v2, %v270_v52  ;;  %v310_v58 = vmul.f32 %v2048_v2, %v271_v53  ;;  %v381_v59 = vld [vmem:[%s2068_s13 + $0xc9] sm:$0xff]  ;;  %v2203_v16 = vld [vmem:[%s2068_s13 + $0xd9] sm:$0xff] }
  0x1c   : > { %v484_v60 = vld [vmem:[%s2068_s13 + $0xc2] sm:$0xff]  ;;  %v485_v61 = vld [vmem:[%s2068_s13 + $0xca] sm:$0xff]  ;;  %v420_v62 = vmul.f32 %v2058_v4, %v380_v54  ;;  %v421_v63 = vmul.f32 %v2058_v4, %v381_v59  ;;  %v629_v18 = vmul.f32 %v2073_v6, %v2195_v9  ;;  %v733_v22 = vmul.f32 %v2078_v7, %v2203_v16  ;;  %v2217_v27 = vld [vmem:[%s2068_s13 + $0xda] sm:$0xff] }
  0x1d   : > { %v524_v0 = vmul.f32 %v2063_v5, %v484_v60  ;;  %v525_v1 = vmul.f32 %v2063_v5, %v485_v61  ;;  %v645_v10 = vadd.f32 %v613_v29, %v540_v55  ;;  %v646_v11 = vadd.f32 %v614_v30, %v541_v56  ;;  %v2200_v15 = vld [vmem:[%s2068_s13 + $0xe0] sm:$0xff]  ;;  %v2223_v52 = vld [vmem:[%s2068_s13 + $0xf0] sm:$0xff]  ;;  %v2226_v53 = vld [vmem:[%s2068_s13 + $0xf8] sm:$0xff] }
  0x1e   : > { %v348_v13 = vadd.f32 %v2053_v3, %v309_v57  ;;  %v349_v14 = vadd.f32 %v2053_v3, %v310_v58  ;;  %v2206_v17 = vld [vmem:[%s2068_s13 + $0xe1] sm:$0xff]  ;;  %v630_v21 = vmul.f32 %v2073_v6, %v2200_v15  ;;  %v837_v54 = vmul.f32 %v2083_v8, %v2217_v27  ;;  %v2237_v56 = vld [vmem:[%s2068_s13 + $0xf1] sm:$0xff]  ;;  %v2240_v61 = vld [vmem:[%s2068_s13 + $0xf9] sm:$0xff] }
  0x1f   : > { %v734_v23 = vmul.f32 %v2078_v7, %v2206_v17  ;;  %v749_v28 = vadd.f32 %v717_v34, %v645_v10  ;;  %v750_v29 = vadd.f32 %v718_v35, %v646_v11  ;;  %v2220_v42 = vld [vmem:[%s2068_s13 + $0xe2] sm:$0xff]  ;;  %v942_v34 = vmul.f32 %v2091_v12, %v2223_v52 }
  0x20   : > { %v452_v30 = vadd.f32 %v420_v62, %v348_v13  ;;  %v453_v41 = vadd.f32 %v421_v63, %v349_v14  ;;  %v838_v55 = vmul.f32 %v2083_v8, %v2220_v42  ;;  %v943_v35 = vmul.f32 %v2091_v12, %v2226_v53  ;;  %v2243_v62 = vld [vmem:[%s2068_s13 + $0xf2] sm:$0xff]  ;;  %v2246_v63 = vld [vmem:[%s2068_s13 + $0xfa] sm:$0xff] }
  0x21   : > { %v853_v57 = vadd.f32 %v821_v36, %v749_v28  ;;  %v854_v58 = vadd.f32 %v822_v37, %v750_v29  ;;  %3261 = vst [vmem:[#allocation3_spill] sm:$0xff] %v2243_v62  ;;  %3262 = vst [vmem:[#allocation4_spill] sm:$0xff] %v2246_v63  ;;  %v1046_v10 = vmul.f32 %v2102_v19, %v2237_v56 }
  0x22   : > { %v556_v59 = vadd.f32 %v524_v0, %v452_v30  ;;  %v557_v60 = vadd.f32 %v525_v1, %v453_v41  ;;  %v1047_v11 = vmul.f32 %v2102_v19, %v2240_v61  ;;  %v1150_v13 = vmul.f32 %v2107_v20, %v2243_v62 }
  0x23   : > { %v1151_v36 = vmul.f32 %v2107_v20, %v2246_v63  ;;  %v958_v37 = vadd.f32 %v926_v43, %v853_v57  ;;  %v959_v0 = vadd.f32 %v927_v44, %v854_v58  ;;  %v295_v28 = vmul.f32 %v2113_v24, %v2048_v2 }
  0x24   : > { %v661_v1 = vadd.f32 %v629_v18, %v556_v59  ;;  %v662_v14 = vadd.f32 %v630_v21, %v557_v60  ;;  %v296_v29 = vmul.f32 %v2116_v25, %v2048_v2  ;;  %v406_v30 = vmul.f32 %v2119_v26, %v2058_v4 }
  0x25   : > { %v407_v41 = vmul.f32 %v2128_v31, %v2058_v4  ;;  %v1062_v62 = vadd.f32 %v2168_v48, %v958_v37  ;;  %v1063_v63 = vadd.f32 %v2172_v49, %v959_v0  ;;  %v334_v18 = vadd.f32 %v2053_v3, %v295_v28  ;;  %v2290_v28 = vld [vmem:[%s2068_s13 + $0x50] sm:$0xff] }
  0x26   : > { %v765_v43 = vadd.f32 %v733_v22, %v661_v1  ;;  %v766_v44 = vadd.f32 %v734_v23, %v662_v14  ;;  %v335_v21 = vadd.f32 %v2053_v3, %v296_v29  ;;  %v510_v24 = vmul.f32 %v2131_v32, %v2063_v5  ;;  %v2285_v1 = vld [vmem:[%s2068_s13 + $0x48] sm:$0xff] }
  0x27   : > { %v511_v25 = vmul.f32 %v2134_v33, %v2063_v5  ;;  %v1166_v26 = vadd.f32 %v2176_v50, %v1062_v62  ;;  %v1167_v31 = vadd.f32 %v2180_v51, %v1063_v63  ;;  %v438_v58 = vadd.f32 %v406_v30, %v334_v18  ;;  %v2295_v30 = vld [vmem:[%s2068_s13 + $0x49] sm:$0xff] }
  0x28   : > { %v869_v57 = vadd.f32 %v837_v54, %v765_v43  ;;  %v870_v48 = vadd.f32 %v838_v55, %v766_v44  ;;  %v439_v49 = vadd.f32 %v407_v41, %v335_v21  ;;  %v615_v22 = vmul.f32 %v2145_v38, %v2073_v6  ;;  %v2301_v43 = vld [vmem:[%s2068_s13 + $0x51] sm:$0xff] }
  0x29   : > { %v616_v23 = vmul.f32 %v2148_v39, %v2073_v6  ;;  %v1198_v59 = vmax.f32 %v1166_v26, 0.0  ;;  %v1199_v32 = vmax.f32 %v1167_v31, 0.0  ;;  %v542_v50 = vadd.f32 %v510_v24, %v438_v58  ;;  %v2306_v18 = vld [vmem:[%s2068_s13 + $0x4a] sm:$0xff]  ;;  %v2311_v26 = vld [vmem:[%s2068_s13 + $0x52] sm:$0xff] }
  0x2a   : > { %v974_v60 = vadd.f32 %v942_v34, %v869_v57  ;;  %v975_v33 = vadd.f32 %v943_v35, %v870_v48  ;;  %v543_v62 = vadd.f32 %v511_v25, %v439_v49  ;;  %v719_v51 = vmul.f32 %v2151_v40, %v2078_v7 }
  0x2b   : > { %v720_v54 = vmul.f32 %v2158_v45, %v2078_v7  ;;  %v1230_v55 = vpack.c.bf16 %v1199_v32, %v1198_v59  ;;  %v823_v0 = vmul.f32 %v2161_v46, %v2083_v8  ;;  %v647_v34 = vadd.f32 %v615_v22, %v542_v50 }
  0x2c   : > { %v1078_v63 = vadd.f32 %v1046_v10, %v974_v60  ;;  %v1079_v37 = vadd.f32 %v1047_v11, %v975_v33  ;;  %v648_v35 = vadd.f32 %v616_v23, %v543_v62  ;;  %v824_v14 = vmul.f32 %v2164_v47, %v2083_v8 }
  0x2d   : > { %v928_v29 = vmul.f32 %v2091_v12, %v2285_v1  ;;  %1910 = vmatprep.mubr.msk.bf16.mxu0 %vm1254_vm1, %v1230_v55  ;;  %v929_v41 = vmul.f32 %v2091_v12, %v2290_v28  ;;  %v1032_v44 = vmul.f32 %v2102_v19, %v2295_v30  ;;  %v751_v21 = vadd.f32 %v719_v51, %v647_v34  ;;  %v3263_v34 = vld [vmem:[#allocation3_spill] sm:$0xff] }
  0x2e   : > { %v1182_v10 = vadd.f32 %v1150_v13, %v1078_v63  ;;  %v1183_v11 = vadd.f32 %v1151_v36, %v1079_v37  ;;  %v752_v24 = vadd.f32 %v720_v54, %v648_v35  ;;  %v1033_v25 = vmul.f32 %v2102_v19, %v2301_v43  ;;  %v2341_v37 = vld [vmem:[%s2068_s13 + $0x108] sm:$0xff] }
  0x2f   : > { %v1136_v13 = vmul.f32 %v2107_v20, %v2306_v18  ;;  %v1137_v57 = vmul.f32 %v2107_v20, %v2311_v26  ;;  %v311_v48 = vmul.f32 %v2195_v9, %v2048_v2  ;;  %v855_v58 = vadd.f32 %v823_v0, %v751_v21 }
  0x30   : > { %v1214_v36 = vmax.f32 %v1182_v10, 0.0  ;;  %v1215_v31 = vmax.f32 %v1183_v11, 0.0  ;;  %v856_v49 = vadd.f32 %v824_v14, %v752_v24  ;;  %v312_v22 = vmul.f32 %v2200_v15, %v2048_v2  ;;  %v3264_v14 = vld [vmem:[#allocation4_spill] sm:$0xff]  ;;  %v2348_v10 = vld [vmem:[%s2068_s13 + $0x110] sm:$0xff] }
  0x31   : > { %v422_v23 = vmul.f32 %v2203_v16, %v2058_v4  ;;  %v350_v32 = vadd.f32 %v2053_v3, %v311_v48  ;;  %v423_v60 = vmul.f32 %v2206_v17, %v2058_v4  ;;  %v526_v33 = vmul.f32 %v2217_v27, %v2063_v5 }
  0x32   : > { %v1238_v59 = vpack.c.bf16 %v1215_v31, %v1214_v36  ;;  %v960_v50 = vadd.f32 %v928_v29, %v855_v58  ;;  %v961_v9 = vadd.f32 %v929_v41, %v856_v49  ;;  %v351_v62 = vadd.f32 %v2053_v3, %v312_v22  ;;  %v2358_v36 = vld [vmem:[%s2068_s13 + $0x111] sm:$0xff] }
  0x33   : > { %v527_v15 = vmul.f32 %v2220_v42, %v2063_v5  ;;  %v454_v16 = vadd.f32 %v422_v23, %v350_v32  ;;  %v631_v51 = vmul.f32 %v2223_v52, %v2073_v6  ;;  %v632_v17 = vmul.f32 %v2226_v53, %v2073_v6  ;;  %v2361_v31 = vld [vmem:[%s2068_s13 + $0x10a] sm:$0xff]  ;;  %v2368_v22 = vld [vmem:[%s2068_s13 + $0x112] sm:$0xff] }
  0x34   : > { %1926 = vmatprep.mubr.msk.bf16.mxu1 %vm1254_vm1, %v1238_v59  ;;  %v735_v27 = vmul.f32 %v2237_v56, %v2078_v7  ;;  %v1064_v54 = vadd.f32 %v1032_v44, %v960_v50  ;;  %v1065_v55 = vadd.f32 %v1033_v25, %v961_v9  ;;  %v455_v63 = vadd.f32 %v423_v60, %v351_v62  ;;  %v2355_v25 = vld [vmem:[%s2068_s13 + $0x109] sm:$0xff] }
  0x35   : > { %v736_v42 = vmul.f32 %v2240_v61, %v2078_v7  ;;  %v558_v0 = vadd.f32 %v526_v33, %v454_v16  ;;  %v839_v35 = vmul.f32 %v3263_v34, %v2083_v8  ;;  %v840_v29 = vmul.f32 %v3264_v14, %v2083_v8 }
  0x36   : > { %v944_v11 = vmul.f32 %v2091_v12, %v2341_v37  ;;  %v1168_v41 = vadd.f32 %v1136_v13, %v1064_v54  ;;  %v1169_v44 = vadd.f32 %v1137_v57, %v1065_v55  ;;  %v559_v21 = vadd.f32 %v527_v15, %v455_v63 }
  0x37   : > { %v945_v24 = vmul.f32 %v2091_v12, %v2348_v10  ;;  %v663_v48 = vadd.f32 %v631_v51, %v558_v0  ;;  %v1048_v58 = vmul.f32 %v2102_v19, %v2355_v25  ;;  %v1049_v49 = vmul.f32 %v2102_v19, %v2358_v36  ;;  %v2398_v0 = vld [vmem:[%s2068_s13 + $0x60] sm:$0xff] }
  0x38   : > { %v1152_v13 = vmul.f32 %v2107_v20, %v2361_v31  ;;  %v1200_v57 = vmax.f32 %v1168_v41, 0.0  ;;  %v1201_v23 = vmax.f32 %v1169_v44, 0.0  ;;  %v664_v59 = vadd.f32 %v632_v17, %v559_v21  ;;  %v2405_v44 = vld [vmem:[%s2068_s13 + $0x68] sm:$0xff] }
  0x39   : > { %v1153_v32 = vmul.f32 %v2107_v20, %v2368_v22  ;;  %v767_v60 = vadd.f32 %v735_v27, %v663_v48  ;;  %v297_v33 = vmul.f32 %v2145_v38, %v2048_v2  ;;  %v298_v50 = vmul.f32 %v2148_v39, %v2048_v2 }
  0x3a   : > { %v408_v9 = vmul.f32 %v2151_v40, %v2058_v4  ;;  %v1231_v62 = vpack.c.bf16 %v1201_v23, %v1200_v57  ;;  %v768_v15 = vadd.f32 %v736_v42, %v664_v59  ;;  %v409_v16 = vmul.f32 %v2158_v45, %v2058_v4  ;;  %v2412_v59 = vld [vmem:[%s2068_s13 + $0x61] sm:$0xff] }
  0x3b   : > { %v512_v51 = vmul.f32 %v2161_v46, %v2063_v5  ;;  %v871_v17 = vadd.f32 %v839_v35, %v767_v60  ;;  %v336_v27 = vadd.f32 %v2053_v3, %v297_v33  ;;  %v337_v38 = vadd.f32 %v2053_v3, %v298_v50  ;;  %v2418_v60 = vld [vmem:[%s2068_s13 + $0x62] sm:$0xff] }
  0x3c   : > { %v513_v39 = vmul.f32 %v2164_v47, %v2063_v5  ;;  %1911 = vmatmul.mubr.msk.bf16.vlgmr.msra.gmra.mrb[0].mxu0 %vm1254_vm1, %v1231_v62  ;;  %v872_v40 = vadd.f32 %v840_v29, %v768_v15  ;;  %v617_v54 = vmul.f32 %v2285_v1, %v2073_v6  ;;  %v618_v45 = vmul.f32 %v2290_v28, %v2073_v6  ;;  %v2425_v62 = vld [vmem:[%s2068_s13 + $0x6a] sm:$0xff] }
  0x3d   : > { %v721_v46 = vmul.f32 %v2295_v30, %v2078_v7  ;;  %v976_v55 = vadd.f32 %v944_v11, %v871_v17  ;;  %v440_v63 = vadd.f32 %v408_v9, %v336_v27  ;;  %v441_v42 = vadd.f32 %v409_v16, %v337_v38 }
  0x3e   : > { %v722_v47 = vmul.f32 %v2301_v43, %v2078_v7  ;;  %v977_v35 = vadd.f32 %v945_v24, %v872_v40  ;;  %v825_v29 = vmul.f32 %v2306_v18, %v2083_v8  ;;  %v826_v41 = vmul.f32 %v2311_v26, %v2083_v8  ;;  %v2415_v24 = vld [vmem:[%s2068_s13 + $0x69] sm:$0xff] }
  0x3f   : > { %v930_v11 = vmul.f32 %v2091_v12, %v2398_v0  ;;  %v1080_v21 = vadd.f32 %v1048_v58, %v976_v55  ;;  %v544_v48 = vadd.f32 %v512_v51, %v440_v63  ;;  %v545_v57 = vadd.f32 %v513_v39, %v441_v42 }
  0x40   : > { %v931_v23 = vmul.f32 %v2091_v12, %v2405_v44  ;;  %v1081_v33 = vadd.f32 %v1049_v49, %v977_v35  ;;  %v1034_v50 = vmul.f32 %v2102_v19, %v2412_v59  ;;  %v1035_v9 = vmul.f32 %v2102_v19, %v2415_v24 }
  0x41   : > { %v1138_v58 = vmul.f32 %v2107_v20, %v2418_v60  ;;  %v1184_v15 = vadd.f32 %v1152_v13, %v1080_v21  ;;  %v649_v16 = vadd.f32 %v617_v54, %v544_v48  ;;  %v650_v51 = vadd.f32 %v618_v45, %v545_v57 }
  0x42   : > { %v1139_v17 = vmul.f32 %v2107_v20, %v2425_v62  ;;  %v1185_v27 = vadd.f32 %v1153_v32, %v1081_v33  ;;  %v313_v49 = vmul.f32 %v2223_v52, %v2048_v2  ;;  %v314_v38 = vmul.f32 %v2226_v53, %v2048_v2 }
  0x43   : > { %v424_v39 = vmul.f32 %v2237_v56, %v2058_v4  ;;  %v1216_v40 = vmax.f32 %v1184_v15, 0.0  ;;  %v753_v55 = vadd.f32 %v721_v46, %v649_v16  ;;  %v754_v63 = vadd.f32 %v722_v47, %v650_v51  ;;  %v2459_v15 = vld [vmem:[%s2068_s13 + $0x120] sm:$0xff] }
  0x44   : > { %v425_v13 = vmul.f32 %v2240_v61, %v2058_v4  ;;  %v1217_v54 = vmax.f32 %v1185_v27, 0.0  ;;  %v352_v45 = vadd.f32 %v2053_v3, %v313_v49  ;;  %v353_v32 = vadd.f32 %v2053_v3, %v314_v38  ;;  %v2469_v38 = vld [vmem:[%s2068_s13 + $0x121] sm:$0xff] }
  0x45   : > { %v528_v52 = vmul.f32 %v3263_v34, %v2063_v5  ;;  %v857_v42 = vadd.f32 %v825_v29, %v753_v55  ;;  %v858_v35 = vadd.f32 %v826_v41, %v754_v63  ;;  %v529_v53 = vmul.f32 %v3264_v14, %v2063_v5 }
  0x46   : > { %v633_v56 = vmul.f32 %v2341_v37, %v2073_v6  ;;  %v1239_v46 = vpack.c.bf16 %v1217_v54, %v1216_v40  ;;  %v456_v61 = vadd.f32 %v424_v39, %v352_v45  ;;  %v457_v47 = vadd.f32 %v425_v13, %v353_v32  ;;  %v2472_v39 = vld [vmem:[%s2068_s13 + $0x129] sm:$0xff] }
  0x47   : > { %v634_v21 = vmul.f32 %v2348_v10, %v2073_v6  ;;  %v962_v48 = vadd.f32 %v930_v11, %v857_v42  ;;  %v963_v34 = vadd.f32 %v931_v23, %v858_v35  ;;  %v737_v29 = vmul.f32 %v2355_v25, %v2078_v7  ;;  %v2462_v23 = vld [vmem:[%s2068_s13 + $0x128] sm:$0xff] }
  0x48   : > { %v738_v14 = vmul.f32 %v2358_v36, %v2078_v7  ;;  %1927 = vmatmul.mubr.msk.bf16.vlgmr.msra.gmra.mrb[0].mxu1 %vm1254_vm1, %v1239_v46  ;;  %v560_v41 = vadd.f32 %v528_v52, %v456_v61  ;;  %v561_v57 = vadd.f32 %v529_v53, %v457_v47  ;;  %v841_v33 = vmul.f32 %v2361_v31, %v2083_v8 }
  0x49   : > { %v842_v11 = vmul.f32 %v2368_v22, %v2083_v8  ;;  %v1066_v16 = vadd.f32 %v1034_v50, %v962_v48  ;;  %v1067_v51 = vadd.f32 %v1035_v9, %v963_v34  ;;  %v946_v27 = vmul.f32 %v2091_v12, %v2459_v15  ;;  %v2479_v50 = vld [vmem:[%s2068_s13 + $0x122] sm:$0xff]  ;;  %v2482_v9 = vld [vmem:[%s2068_s13 + $0x12a] sm:$0xff] }
  0x4a   : > { %v947_v49 = vmul.f32 %v2091_v12, %v2462_v23  ;;  %v665_v40 = vadd.f32 %v633_v56, %v560_v41  ;;  %v666_v55 = vadd.f32 %v634_v21, %v561_v57  ;;  %v1050_v63 = vmul.f32 %v2102_v19, %v2469_v38 }
  0x4b   : > { %v1051_v13 = vmul.f32 %v2102_v19, %v2472_v39  ;;  %v1170_v54 = vadd.f32 %v1138_v58, %v1066_v16  ;;  %v1171_v45 = vadd.f32 %v1139_v17, %v1067_v51  ;;  %v1154_v32 = vmul.f32 %v2107_v20, %v2479_v50 }
  0x4c   : > { %v1155_v52 = vmul.f32 %v2107_v20, %v2482_v9  ;;  %v769_v42 = vadd.f32 %v737_v29, %v665_v40  ;;  %v770_v35 = vadd.f32 %v738_v14, %v666_v55  ;;  %v299_v53 = vmul.f32 %v2285_v1, %v2048_v2  ;;  %v2514_v40 = vld [vmem:[%s2068_s13 + $0x78] sm:$0xff]  ;;  %v2517_v55 = vld [vmem:[%s2068_s13 + $0x80] sm:$0xff] }
  0x4d   : > { %v300_v56 = vmul.f32 %v2290_v28, %v2048_v2  ;;  %v1202_v46 = vmax.f32 %v1170_v54, 0.0  ;;  %v1203_v61 = vmax.f32 %v1171_v45, 0.0  ;;  %v410_v58 = vmul.f32 %v2295_v30, %v2058_v4  ;;  %v2520_v54 = vld [vmem:[%s2068_s13 + $0x79] sm:$0xff] }
  0x4e   : > { %v411_v17 = vmul.f32 %v2301_v43, %v2058_v4  ;;  %v873_v47 = vadd.f32 %v841_v33, %v769_v42  ;;  %v874_v21 = vadd.f32 %v842_v11, %v770_v35  ;;  %v338_v48 = vadd.f32 %v2053_v3, %v299_v53 }
  0x4f   : > { %v339_v34 = vadd.f32 %v2053_v3, %v300_v56  ;;  %v1232_v29 = vpack.c.bf16 %v1203_v61, %v1202_v46  ;;  %v514_v1 = vmul.f32 %v2306_v18, %v2063_v5  ;;  %v515_v28 = vmul.f32 %v2311_v26, %v2063_v5  ;;  %v2531_v61 = vld [vmem:[%s2068_s13 + $0x81] sm:$0xff] }
  0x50   : > { %v619_v30 = vmul.f32 %v2398_v0, %v2073_v6  ;;  %v978_v43 = vadd.f32 %v946_v27, %v873_v47  ;;  %v979_v14 = vadd.f32 %v947_v49, %v874_v21  ;;  %v442_v41 = vadd.f32 %v410_v58, %v338_v48  ;;  %v2534_v58 = vld [vmem:[%s2068_s13 + $0x7a] sm:$0xff] }
  0x51   : > { %v443_v57 = vadd.f32 %v411_v17, %v339_v34  ;;  %1914 = vmatprep.mubr.msk.bf16.mxu0 %vm1254_vm1, %v1232_v29  ;;  %v620_v33 = vmul.f32 %v2405_v44, %v2073_v6  ;;  %v723_v18 = vmul.f32 %v2412_v59, %v2078_v7  ;;  %v724_v26 = vmul.f32 %v2415_v24, %v2078_v7  ;;  %v2537_v17 = vld [vmem:[%s2068_s13 + $0x82] sm:$0xff] }
  0x52   : > { %v827_v11 = vmul.f32 %v2418_v60, %v2083_v8  ;;  %v1082_v16 = vadd.f32 %v1050_v63, %v978_v43  ;;  %v1083_v51 = vadd.f32 %v1051_v13, %v979_v14  ;;  %v546_v27 = vadd.f32 %v514_v1, %v442_v41 }
  0x53   : > { %v547_v49 = vadd.f32 %v515_v28, %v443_v57  ;;  %v828_v45 = vmul.f32 %v2425_v62, %v2083_v8  ;;  %v932_v42 = vmul.f32 %v2091_v12, %v2514_v40  ;;  %v933_v63 = vmul.f32 %v2091_v12, %v2517_v55 }
  0x54   : > { %v1036_v13 = vmul.f32 %v2102_v19, %v2520_v54  ;;  %v1186_v35 = vadd.f32 %v1154_v32, %v1082_v16  ;;  %v1187_v53 = vadd.f32 %v1155_v52, %v1083_v51  ;;  %v651_v56 = vadd.f32 %v619_v30, %v546_v27 }
  0x55   : > { %v652_v46 = vadd.f32 %v620_v33, %v547_v49  ;;  %v1037_v47 = vmul.f32 %v2102_v19, %v2531_v61  ;;  %v1140_v21 = vmul.f32 %v2107_v20, %v2534_v58  ;;  %v1141_v48 = vmul.f32 %v2107_v20, %v2537_v17 }
  0x56   : > { %v315_v32 = vmul.f32 %v2341_v37, %v2048_v2  ;;  %v1218_v52 = vmax.f32 %v1186_v35, 0.0  ;;  %v1219_v34 = vmax.f32 %v1187_v53, 0.0  ;;  %v755_v29 = vadd.f32 %v723_v18, %v651_v56  ;;  %v2576_v53 = vld [vmem:[%s2068_s13 + $0x140] sm:$0xff] }
  0x57   : > { %v756_v1 = vadd.f32 %v724_v26, %v652_v46  ;;  %v316_v28 = vmul.f32 %v2348_v10, %v2048_v2  ;;  %v426_v43 = vmul.f32 %v2355_v25, %v2058_v4  ;;  %v427_v14 = vmul.f32 %v2358_v36, %v2058_v4  ;;  %v2581_v46 = vld [vmem:[%s2068_s13 + $0x139] sm:$0xff] }
  0x58   : > { %v354_v30 = vadd.f32 %v2053_v3, %v315_v32  ;;  %v1240_v41 = vpack.c.bf16 %v1219_v34, %v1218_v52  ;;  %v859_v57 = vadd.f32 %v827_v11, %v755_v29  ;;  %v530_v37 = vmul.f32 %v2361_v31, %v2063_v5  ;;  %v2586_v29 = vld [vmem:[%s2068_s13 + $0x141] sm:$0xff] }
  0x59   : > { %v860_v33 = vadd.f32 %v828_v45, %v756_v1  ;;  %v355_v18 = vadd.f32 %v2053_v3, %v316_v28  ;;  %v531_v10 = vmul.f32 %v2368_v22, %v2063_v5  ;;  %v635_v25 = vmul.f32 %v2459_v15, %v2073_v6  ;;  %v2571_v45 = vld [vmem:[%s2068_s13 + $0x138] sm:$0xff] }
  0x5a   : > { %v458_v26 = vadd.f32 %v426_v43, %v354_v30  ;;  %1930 = vmatprep.mubr.msk.bf16.mxu1 %vm1254_vm1, %v1240_v41  ;;  %v964_v36 = vadd.f32 %v932_v42, %v859_v57  ;;  %v636_v16 = vmul.f32 %v2462_v23, %v2073_v6  ;;  %v739_v31 = vmul.f32 %v2469_v38, %v2078_v7  ;;  %v2596_v43 = vld [vmem:[%s2068_s13 + $0x142] sm:$0xff] }
  0x5b   : > { %v965_v11 = vadd.f32 %v933_v63, %v860_v33  ;;  %v459_v51 = vadd.f32 %v427_v14, %v355_v18  ;;  %v740_v22 = vmul.f32 %v2472_v39, %v2078_v7  ;;  %v843_v49 = vmul.f32 %v2479_v50, %v2083_v8 }
  0x5c   : > { %v562_v27 = vadd.f32 %v530_v37, %v458_v26  ;;  %v1068_v42 = vadd.f32 %v1036_v13, %v964_v36  ;;  %v844_v35 = vmul.f32 %v2482_v9, %v2083_v8  ;;  %v948_v56 = vmul.f32 %v2091_v12, %v2571_v45 }
  0x5d   : > { %v1069_v63 = vadd.f32 %v1037_v47, %v965_v11  ;;  %v563_v32 = vadd.f32 %v531_v10, %v459_v51  ;;  %v949_v34 = vmul.f32 %v2091_v12, %v2576_v53  ;;  %v1052_v13 = vmul.f32 %v2102_v19, %v2581_v46  ;;  %v2591_v47 = vld [vmem:[%s2068_s13 + $0x13a] sm:$0xff] }
  0x5e   : > { %v667_v52 = vadd.f32 %v635_v25, %v562_v27  ;;  %v1172_v1 = vadd.f32 %v1140_v21, %v1068_v42  ;;  %v1053_v30 = vmul.f32 %v2102_v19, %v2586_v29  ;;  %v1156_v14 = vmul.f32 %v2107_v20, %v2591_v47 }
  0x5f   : > { %v1173_v28 = vadd.f32 %v1141_v48, %v1069_v63  ;;  %v668_v41 = vadd.f32 %v636_v16, %v563_v32  ;;  %v1157_v33 = vmul.f32 %v2107_v20, %v2596_v43  ;;  %v301_v37 = vmul.f32 %v2398_v0, %v2048_v2  ;;  %v2628_v32 = vld [vmem:[%s2068_s13 + $0x90] sm:$0xff] }
  0x60   : > { %v771_v57 = vadd.f32 %v739_v31, %v667_v52  ;;  %v1204_v18 = vmax.f32 %v1172_v1, 0.0  ;;  %v302_v21 = vmul.f32 %v2405_v44, %v2048_v2  ;;  %v412_v48 = vmul.f32 %v2412_v59, %v2058_v4  ;;  %v2631_v52 = vld [vmem:[%s2068_s13 + $0x98] sm:$0xff] }
  0x61   : > { %v1205_v26 = vmax.f32 %v1173_v28, 0.0  ;;  %v772_v10 = vadd.f32 %v740_v22, %v668_v41  ;;  %v340_v36 = vadd.f32 %v2053_v3, %v301_v37  ;;  %v413_v11 = vmul.f32 %v2415_v24, %v2058_v4 }
  0x62   : > { %v875_v25 = vadd.f32 %v843_v49, %v771_v57  ;;  %v341_v31 = vadd.f32 %v2053_v3, %v302_v21  ;;  %v516_v0 = vmul.f32 %v2418_v60, %v2063_v5  ;;  %v517_v44 = vmul.f32 %v2425_v62, %v2063_v5 }
  0x63   : > { %v1233_v16 = vpack.c.bf16 %v1205_v26, %v1204_v18  ;;  %v876_v51 = vadd.f32 %v844_v35, %v772_v10  ;;  %v444_v27 = vadd.f32 %v412_v48, %v340_v36  ;;  %v621_v22 = vmul.f32 %v2514_v40, %v2073_v6  ;;  %v2643_v26 = vld [vmem:[%s2068_s13 + $0x99] sm:$0xff] }
  0x64   : > { %v980_v59 = vadd.f32 %v948_v56, %v875_v25  ;;  %v445_v24 = vadd.f32 %v413_v11, %v341_v31  ;;  %v622_v49 = vmul.f32 %v2517_v55, %v2073_v6  ;;  %v725_v60 = vmul.f32 %v2520_v54, %v2078_v7  ;;  %v2648_v48 = vld [vmem:[%s2068_s13 + $0x92] sm:$0xff]  ;;  %v2651_v10 = vld [vmem:[%s2068_s13 + $0x9a] sm:$0xff] }
  0x65   : > { %1915 = vmatmul.mubr.msk.bf16.gmra.mrb[4].mxu0 %vm1254_vm1, %v1233_v16  ;;  %v726_v62 = vmul.f32 %v2531_v61, %v2078_v7  ;;  %v981_v42 = vadd.f32 %v949_v34, %v876_v51  ;;  %v548_v35 = vadd.f32 %v516_v0, %v444_v27  ;;  %v829_v56 = vmul.f32 %v2534_v58, %v2083_v8 }
  0x66   : > { %v1084_v63 = vadd.f32 %v1052_v13, %v980_v59  ;;  %v549_v1 = vadd.f32 %v517_v44, %v445_v24  ;;  %v830_v28 = vmul.f32 %v2537_v17, %v2083_v8  ;;  %v934_v41 = vmul.f32 %v2091_v12, %v2628_v32  ;;  %v2640_v13 = vld [vmem:[%s2068_s13 + $0x91] sm:$0xff] }
  0x67   : > { %v935_v34 = vmul.f32 %v2091_v12, %v2631_v52  ;;  %v1085_v57 = vadd.f32 %v1053_v30, %v981_v42  ;;  %v653_v18 = vadd.f32 %v621_v22, %v548_v35  ;;  %v1038_v21 = vmul.f32 %v2102_v19, %v2640_v13 }
  0x68   : > { %v1188_v37 = vadd.f32 %v1156_v14, %v1084_v63  ;;  %v654_v25 = vadd.f32 %v622_v49, %v549_v1  ;;  %v1039_v36 = vmul.f32 %v2102_v19, %v2643_v26  ;;  %v1142_v11 = vmul.f32 %v2107_v20, %v2648_v48 }
  0x69   : > { %v1143_v30 = vmul.f32 %v2107_v20, %v2651_v10  ;;  %v1189_v14 = vadd.f32 %v1157_v33, %v1085_v57  ;;  %v757_v31 = vadd.f32 %v725_v60, %v653_v18  ;;  %v317_v0 = vmul.f32 %v2459_v15, %v2048_v2  ;;  %v2687_v57 = vld [vmem:[%s2068_s13 + $0x150] sm:$0xff] }
  0x6a   : > { %v1220_v16 = vmax.f32 %v1188_v37, 0.0  ;;  %v758_v44 = vadd.f32 %v726_v62, %v654_v25  ;;  %v318_v51 = vmul.f32 %v2462_v23, %v2048_v2  ;;  %v428_v59 = vmul.f32 %v2469_v38, %v2058_v4  ;;  %v2690_v37 = vld [vmem:[%s2068_s13 + $0x158] sm:$0xff] }
  0x6b   : > { %v429_v27 = vmul.f32 %v2472_v39, %v2058_v4  ;;  %v1221_v22 = vmax.f32 %v1189_v14, 0.0  ;;  %v861_v24 = vadd.f32 %v829_v56, %v757_v31  ;;  %v356_v49 = vadd.f32 %v2053_v3, %v317_v0  ;;  %v2700_v31 = vld [vmem:[%s2068_s13 + $0x159] sm:$0xff] }
  0x6c   : > { %v532_v33 = vmul.f32 %v2479_v50, %v2063_v5  ;;  %v862_v60 = vadd.f32 %v830_v28, %v758_v44  ;;  %v357_v15 = vadd.f32 %v2053_v3, %v318_v51  ;;  %v533_v23 = vmul.f32 %v2482_v9, %v2063_v5 }
  0x6d   : > { %v637_v38 = vmul.f32 %v2571_v45, %v2073_v6  ;;  %v1241_v62 = vpack.c.bf16 %v1221_v22, %v1220_v16  ;;  %v966_v39 = vadd.f32 %v934_v41, %v861_v24  ;;  %v460_v42 = vadd.f32 %v428_v59, %v356_v49  ;;  %v2697_v16 = vld [vmem:[%s2068_s13 + $0x151] sm:$0xff] }
  0x6e   : > { %v638_v63 = vmul.f32 %v2576_v53, %v2073_v6  ;;  %v967_v35 = vadd.f32 %v935_v34, %v862_v60  ;;  %v461_v50 = vadd.f32 %v429_v27, %v357_v15  ;;  %v741_v56 = vmul.f32 %v2581_v46, %v2078_v7  ;;  %v2710_v27 = vld [vmem:[%s2068_s13 + $0x15a] sm:$0xff] }
  0x6f   : > { %v742_v9 = vmul.f32 %v2586_v29, %v2078_v7  ;;  %1931 = vmatmul.mubr.msk.bf16.gmra.mrb[4].mxu1 %vm1254_vm1, %v1241_v62  ;;  %v1070_v1 = vadd.f32 %v1038_v21, %v966_v39  ;;  %v564_v28 = vadd.f32 %v532_v33, %v460_v42  ;;  %v845_v41 = vmul.f32 %v2591_v47, %v2083_v8 }
  0x70   : > { %v846_v34 = vmul.f32 %v2596_v43, %v2083_v8  ;;  %v1071_v18 = vadd.f32 %v1039_v36, %v967_v35  ;;  %v565_v25 = vadd.f32 %v533_v23, %v461_v50  ;;  %v950_v14 = vmul.f32 %v2091_v12, %v2687_v57  ;;  %v2707_v36 = vld [vmem:[%s2068_s13 + $0x152] sm:$0xff] }
  0x71   : > { %v951_v21 = vmul.f32 %v2091_v12, %v2690_v37  ;;  %v1174_v0 = vadd.f32 %v1142_v11, %v1070_v1  ;;  %v669_v44 = vadd.f32 %v637_v38, %v564_v28  ;;  %v1054_v51 = vmul.f32 %v2102_v19, %v2697_v16 }
  0x72   : > { %v1055_v59 = vmul.f32 %v2102_v19, %v2700_v31  ;;  %v1175_v22 = vadd.f32 %v1143_v30, %v1071_v18  ;;  %v670_v24 = vadd.f32 %v638_v63, %v565_v25  ;;  %v1158_v49 = vmul.f32 %v2107_v20, %v2707_v36  ;;  %v2747_v18 = vld [vmem:[%s2068_s13 + $0xb0] sm:$0xff] }
  0x73   : > { %v1159_v33 = vmul.f32 %v2107_v20, %v2710_v27  ;;  %v1206_v11 = vmax.f32 %v1174_v0, 0.0  ;;  %v773_v60 = vadd.f32 %v741_v56, %v669_v44  ;;  %v303_v15 = vmul.f32 %v2514_v40, %v2048_v2  ;;  %v2750_v25 = vld [vmem:[%s2068_s13 + $0xa9] sm:$0xff]  ;;  %v2757_v0 = vld [vmem:[%s2068_s13 + $0xb1] sm:$0xff] }
  0x74   : > { %v304_v23 = vmul.f32 %v2517_v55, %v2048_v2  ;;  %v1207_v38 = vmax.f32 %v1175_v22, 0.0  ;;  %v774_v62 = vadd.f32 %v742_v9, %v670_v24  ;;  %v414_v30 = vmul.f32 %v2520_v54, %v2058_v4 }
  0x75   : > { %v415_v39 = vmul.f32 %v2531_v61, %v2058_v4  ;;  %v877_v42 = vadd.f32 %v845_v41, %v773_v60  ;;  %v342_v63 = vadd.f32 %v2053_v3, %v303_v15  ;;  %v518_v50 = vmul.f32 %v2534_v58, %v2063_v5 }
  0x76   : > { %v343_v35 = vadd.f32 %v2053_v3, %v304_v23  ;;  %v1234_v40 = vpack.c.bf16 %v1207_v38, %v1206_v11  ;;  %v878_v56 = vadd.f32 %v846_v34, %v774_v62  ;;  %v519_v2 = vmul.f32 %v2537_v17, %v2063_v5  ;;  %v2744_v34 = vld [vmem:[%s2068_s13 + $0xa8] sm:$0xff] }
  0x77   : > { %v623_v55 = vmul.f32 %v2628_v32, %v2073_v6  ;;  %v982_v4 = vadd.f32 %v950_v14, %v877_v42  ;;  %v446_v54 = vadd.f32 %v414_v30, %v342_v63  ;;  %v624_v3 = vmul.f32 %v2631_v52, %v2073_v6  ;;  %v2764_v11 = vld [vmem:[%s2068_s13 + $0xaa] sm:$0xff]  ;;  %v2791_v42 = vld [vmem:[%s3251_s1 + $0x1] ss:$0 sm:$0xff] }
  0x78   : > { %v447_v61 = vadd.f32 %v415_v39, %v343_v35  ;;  %1918 = vmatprep.mubr.msk.bf16.mxu0 %vm1254_vm1, %v1234_v40  ;;  %v983_v58 = vadd.f32 %v951_v21, %v878_v56  ;;  %v727_v9 = vmul.f32 %v2640_v13, %v2078_v7  ;;  %v728_v5 = vmul.f32 %v2643_v26, %v2078_v7  ;;  %v2785_v39 = vld [vmem:[%s3252_s2] ss:$0 sm:$0xff]  ;;  %v2801_v40 = vld [vmem:[%s3251_s1 + $0x2] ss:$0 sm:$0xff] }
  0x79   : > { %v831_v17 = vmul.f32 %v2648_v48, %v2083_v8  ;;  %v1086_v1 = vadd.f32 %v1054_v51, %v982_v4  ;;  %v550_v28 = vadd.f32 %v518_v50, %v446_v54  ;;  %v832_v6 = vmul.f32 %v2651_v10, %v2083_v8 }
  0x7a   : > { %v551_v41 = vadd.f32 %v519_v2, %v447_v61  ;;  %v1087_v14 = vadd.f32 %v1055_v59, %v983_v58  ;;  %v936_v7 = vmul.f32 %v2091_v12, %v2744_v34  ;;  %v937_v21 = vmul.f32 %v2091_v12, %v2747_v18  ;;  %v2767_v59 = vld [vmem:[%s2068_s13 + $0xb2] sm:$0xff]  ;;  %v2820_v58 = vld [vmem:[%s3251_s1 + $0x4] ss:$0 sm:$0xff] }
  0x7b   : > { %v1040_v44 = vmul.f32 %v2102_v19, %v2750_v25  ;;  %v1190_v51 = vadd.f32 %v1158_v49, %v1086_v1  ;;  %v655_v8 = vadd.f32 %v623_v55, %v550_v28  ;;  %v1041_v24 = vmul.f32 %v2102_v19, %v2757_v0  ;;  %v2776_v49 = vld [vmem:[%s3251_s1] ss:$0 sm:$0xff] }
  0x7c   : > { %v656_v22 = vadd.f32 %v624_v3, %v551_v41  ;;  %v1191_v60 = vadd.f32 %v1159_v33, %v1087_v14  ;;  %v1144_v15 = vmul.f32 %v2107_v20, %v2764_v11  ;;  %v1145_v12 = vmul.f32 %v2107_v20, %v2767_v59 }
  0x7d   : > { %v319_v23 = vmul.f32 %v2776_v49, %v2571_v45  ;;  %v1222_v19 = vmax.f32 %v1190_v51, 0.0  ;;  %v759_v38 = vadd.f32 %v727_v9, %v655_v8  ;;  %v320_v33 = vmul.f32 %v2776_v49, %v2576_v53  ;;  %v2842_v51 = vld [vmem:[%s2068_s13 + $0x169] sm:$0xff] }
  0x7e   : > { %v760_v62 = vadd.f32 %v728_v5, %v656_v22  ;;  %v1223_v30 = vmax.f32 %v1191_v60, 0.0  ;;  %v430_v45 = vmul.f32 %v2791_v42, %v2581_v46  ;;  %v431_v63 = vmul.f32 %v2791_v42, %v2586_v29  ;;  %v2810_v29 = vld [vmem:[%s3251_s1 + $0x3] ss:$0 sm:$0xff]  ;;  %v2847_v22 = vld [vmem:[%s3251_s1 + $0x6] ss:$0 sm:$0xff]  ;;  %v2854_v60 = vld [vmem:[%s2068_s13 + $0x171] sm:$0xff] }
  0x7f   : > { %v358_v20 = vadd.f32 %v2785_v39, %v319_v23  ;;  %v863_v53 = vadd.f32 %v831_v17, %v759_v38  ;;  %v359_v50 = vadd.f32 %v2785_v39, %v320_v33  ;;  %v534_v56 = vmul.f32 %v2801_v40, %v2591_v47  ;;  %v2829_v17 = vld [vmem:[%s3251_s1 + $0x5] ss:$0 sm:$0xff]  ;;  %v2859_v23 = vld [vmem:[%s3251_s1 + $0x7] ss:$0 sm:$0xff] }
  0x80   : > { %v864_v35 = vadd.f32 %v832_v6, %v760_v62  ;;  %v1242_v2 = vpack.c.bf16 %v1223_v30, %v1222_v19  ;;  %v535_v46 = vmul.f32 %v2801_v40, %v2596_v43  ;;  %v639_v4 = vmul.f32 %v2810_v29, %v2687_v57 }
  0x81   : > { %v462_v55 = vadd.f32 %v430_v45, %v358_v20  ;;  %v968_v54 = vadd.f32 %v936_v7, %v863_v53  ;;  %v463_v3 = vadd.f32 %v431_v63, %v359_v50  ;;  %v640_v47 = vmul.f32 %v2810_v29, %v2690_v37  ;;  %v2836_v7 = vld [vmem:[%s2068_s13 + $0x168] sm:$0xff]  ;;  %v2869_v45 = vld [vmem:[%s2068_s13 + $0x172] sm:$0xff] }
  0x82   : > { %v969_v61 = vadd.f32 %v937_v21, %v864_v35  ;;  %1934 = vmatprep.mubr.msk.bf16.mxu1 %vm1254_vm1, %v1242_v2  ;;  %v743_v9 = vmul.f32 %v2820_v58, %v2697_v16  ;;  %v744_v5 = vmul.f32 %v2820_v58, %v2700_v31  ;;  %v847_v1 = vmul.f32 %v2829_v17, %v2707_v36  ;;  %v2839_v21 = vld [vmem:[%s2068_s13 + $0x170] sm:$0xff]  ;;  %v2874_v53 = vld [vmem:[%s3251_s1 + $0x8] ss:$0 sm:$0xff] }
  0x83   : > { %v566_v43 = vadd.f32 %v534_v56, %v462_v55  ;;  %v1072_v28 = vadd.f32 %v1040_v44, %v968_v54  ;;  %v567_v6 = vadd.f32 %v535_v46, %v463_v3  ;;  %v848_v14 = vmul.f32 %v2829_v17, %v2710_v27  ;;  %v2866_v20 = vld [vmem:[%s2068_s13 + $0x16a] sm:$0xff] }
  0x84   : > { %v1073_v41 = vadd.f32 %v1041_v24, %v969_v61  ;;  %v952_v44 = vmul.f32 %v2847_v22, %v2836_v7  ;;  %v953_v24 = vmul.f32 %v2847_v22, %v2839_v21  ;;  %v1056_v19 = vmul.f32 %v2859_v23, %v2842_v51 }
  0x85   : > { %v671_v8 = vadd.f32 %v639_v4, %v566_v43  ;;  %v1176_v38 = vadd.f32 %v1144_v15, %v1072_v28  ;;  %v672_v33 = vadd.f32 %v640_v47, %v567_v6  ;;  %v1057_v30 = vmul.f32 %v2859_v23, %v2854_v60 }
  0x86   : > { %v1177_v62 = vadd.f32 %v1145_v12, %v1073_v41  ;;  %v1160_v35 = vmul.f32 %v2874_v53, %v2866_v20  ;;  %v1161_v15 = vmul.f32 %v2874_v53, %v2869_v45  ;;  %v305_v12 = vmul.f32 %v2776_v49, %v2628_v32 }
  0x87   : > { %v775_v63 = vadd.f32 %v743_v9, %v671_v8  ;;  %v1208_v50 = vmax.f32 %v1176_v38, 0.0  ;;  %v776_v2 = vadd.f32 %v744_v5, %v672_v33  ;;  %v306_v55 = vmul.f32 %v2776_v49, %v2631_v52  ;;  %v2906_v38 = vld [vmem:[%s2068_s13 + $0xc0] sm:$0xff] }
  0x88   : > { %v1209_v56 = vmax.f32 %v1177_v62, 0.0  ;;  %v344_v4 = vadd.f32 %v2785_v39, %v305_v12  ;;  %v416_v54 = vmul.f32 %v2791_v42, %v2640_v13  ;;  %v417_v61 = vmul.f32 %v2791_v42, %v2643_v26  ;;  %v2916_v12 = vld [vmem:[%s2068_s13 + $0xc1] sm:$0xff] }
  0x89   : > { %v879_v46 = vadd.f32 %v847_v1, %v775_v63  ;;  %v880_v47 = vadd.f32 %v848_v14, %v776_v2  ;;  %v345_v32 = vadd.f32 %v2785_v39, %v306_v55  ;;  %v520_v43 = vmul.f32 %v2801_v40, %v2648_v48  ;;  %v2911_v63 = vld [vmem:[%s2068_s13 + $0xc8] sm:$0xff] }
  0x8a   : > { %v1235_v3 = vpack.c.bf16 %v1209_v56, %v1208_v50  ;;  %v448_v5 = vadd.f32 %v416_v54, %v344_v4  ;;  %v521_v52 = vmul.f32 %v2801_v40, %v2651_v10  ;;  %v625_v1 = vmul.f32 %v2810_v29, %v2744_v34  ;;  %v2921_v55 = vld [vmem:[%s2068_s13 + $0xc9] sm:$0xff] }
  0x8b   : > { %v984_v9 = vadd.f32 %v952_v44, %v879_v46  ;;  %v985_v28 = vadd.f32 %v953_v24, %v880_v47  ;;  %v449_v41 = vadd.f32 %v417_v61, %v345_v32  ;;  %v626_v6 = vmul.f32 %v2810_v29, %v2747_v18  ;;  %v2926_v46 = vld [vmem:[%s2068_s13 + $0xc2] sm:$0xff] }
  0x8c   : > { %1919 = vmatmul.mubr.msk.bf16.gmra.mrb[8].mxu0 %vm1254_vm1, %v1235_v3  ;;  %v729_v48 = vmul.f32 %v2820_v58, %v2750_v25  ;;  %v552_v8 = vadd.f32 %v520_v43, %v448_v5  ;;  %v730_v10 = vmul.f32 %v2820_v58, %v2757_v0  ;;  %v833_v44 = vmul.f32 %v2829_v17, %v2764_v11  ;;  %v2931_v3 = vld [vmem:[%s2068_s13 + $0xca] sm:$0xff] }
  0x8d   : > { %v1088_v14 = vadd.f32 %v1056_v19, %v984_v9  ;;  %v1089_v24 = vadd.f32 %v1057_v30, %v985_v28  ;;  %v553_v62 = vadd.f32 %v521_v52, %v449_v41  ;;  %v834_v33 = vmul.f32 %v2829_v17, %v2767_v59 }
  0x8e   : > { %v938_v19 = vmul.f32 %v2847_v22, %v2906_v38  ;;  %v657_v56 = vadd.f32 %v625_v1, %v552_v8  ;;  %v939_v2 = vmul.f32 %v2847_v22, %v2911_v63  ;;  %v1042_v30 = vmul.f32 %v2859_v23, %v2916_v12 }
  0x8f   : > { %v1192_v50 = vadd.f32 %v1160_v35, %v1088_v14  ;;  %v1193_v4 = vadd.f32 %v1161_v15, %v1089_v24  ;;  %v658_v54 = vadd.f32 %v626_v6, %v553_v62  ;;  %v1043_v61 = vmul.f32 %v2859_v23, %v2921_v55 }
  0x90   : > { %v1146_v35 = vmul.f32 %v2874_v53, %v2926_v46  ;;  %v761_v32 = vadd.f32 %v729_v48, %v657_v56  ;;  %v1147_v43 = vmul.f32 %v2874_v53, %v2931_v3  ;;  %v321_v9 = vmul.f32 %v2776_v49, %v2687_v57 }
  0x91   : > { %v1224_v47 = vmax.f32 %v1192_v50, 0.0  ;;  %v1225_v5 = vmax.f32 %v1193_v4, 0.0  ;;  %v762_v52 = vadd.f32 %v730_v10, %v658_v54  ;;  %v322_v15 = vmul.f32 %v2776_v49, %v2690_v37 }
  0x92   : > { %v432_v1 = vmul.f32 %v2791_v42, %v2697_v16  ;;  %v865_v28 = vadd.f32 %v833_v44, %v761_v32  ;;  %v360_v41 = vadd.f32 %v2785_v39, %v321_v9  ;;  %v433_v6 = vmul.f32 %v2791_v42, %v2700_v31 }
  0x93   : > { %v536_v48 = vmul.f32 %v2801_v40, %v2707_v36  ;;  %v1243_v14 = vpack.c.bf16 %v1225_v5, %v1224_v47  ;;  %v866_v8 = vadd.f32 %v834_v33, %v762_v52  ;;  %v361_v57 = vadd.f32 %v2785_v39, %v322_v15  ;;  %v2965_v47 = vld [vmem:[%s2068_s13 + $0x180] sm:$0xff]  ;;  %v2978_v15 = vld [vmem:[%s2068_s13 + $0x189] sm:$0xff] }
  0x94   : > { %v537_v37 = vmul.f32 %v2801_v40, %v2710_v27  ;;  %v970_v10 = vadd.f32 %v938_v19, %v865_v28  ;;  %v464_v24 = vadd.f32 %v432_v1, %v360_v41  ;;  %v641_v44 = vmul.f32 %v2810_v29, %v2836_v7  ;;  %v2975_v52 = vld [vmem:[%s2068_s13 + $0x181] sm:$0xff] }
  0x95   : > { %v642_v62 = vmul.f32 %v2810_v29, %v2839_v21  ;;  %1935 = vmatmul.mubr.msk.bf16.gmra.mrb[8].mxu1 %vm1254_vm1, %v1243_v14  ;;  %v971_v36 = vadd.f32 %v939_v2, %v866_v8  ;;  %v465_v33 = vadd.f32 %v433_v6, %v361_v57  ;;  %v745_v50 = vmul.f32 %v2820_v58, %v2842_v51  ;;  %v2968_v2 = vld [vmem:[%s2068_s13 + $0x188] sm:$0xff] }
  0x96   : > { %v746_v27 = vmul.f32 %v2820_v58, %v2854_v60  ;;  %v1074_v19 = vadd.f32 %v1042_v30, %v970_v10  ;;  %v568_v56 = vadd.f32 %v536_v48, %v464_v24  ;;  %v849_v4 = vmul.f32 %v2829_v17, %v2866_v20  ;;  %v2988_v48 = vld [vmem:[%s2068_s13 + $0x18a] sm:$0xff] }
  0x97   : > { %v850_v54 = vmul.f32 %v2829_v17, %v2869_v45  ;;  %v1075_v32 = vadd.f32 %v1043_v61, %v971_v36  ;;  %v569_v9 = vadd.f32 %v537_v37, %v465_v33  ;;  %v954_v5 = vmul.f32 %v2847_v22, %v2965_v47  ;;  %v2985_v61 = vld [vmem:[%s2068_s13 + $0x182] sm:$0xff] }
  0x98   : > { %v955_v30 = vmul.f32 %v2847_v22, %v2968_v2  ;;  %v1178_v1 = vadd.f32 %v1146_v35, %v1074_v19  ;;  %v673_v28 = vadd.f32 %v641_v44, %v568_v56  ;;  %v1058_v41 = vmul.f32 %v2859_v23, %v2975_v52 }
  0x99   : > { %v1059_v6 = vmul.f32 %v2859_v23, %v2978_v15  ;;  %v1179_v14 = vadd.f32 %v1147_v43, %v1075_v32  ;;  %v674_v8 = vadd.f32 %v642_v62, %v569_v9  ;;  %v1162_v57 = vmul.f32 %v2874_v53, %v2985_v61 }
  0x9a   : > { %v1163_v37 = vmul.f32 %v2874_v53, %v2988_v48  ;;  %v1210_v35 = vmax.f32 %v1178_v1, 0.0  ;;  %v777_v10 = vadd.f32 %v745_v50, %v673_v28  ;;  %v307_v24 = vmul.f32 %v2776_v49, %v2744_v34 }
  0x9b   : > { %v308_v44 = vmul.f32 %v2776_v49, %v2747_v18  ;;  %v1211_v36 = vmax.f32 %v1179_v14, 0.0  ;;  %v778_v33 = vadd.f32 %v746_v27, %v674_v8  ;;  %v418_v43 = vmul.f32 %v2791_v42, %v2750_v25  ;;  %v1783_v8 = vld [vmem:[%s2068_s13 + $0xd8] sm:$0xff] }
  0x9c   : > { %v419_v62 = vmul.f32 %v2791_v42, %v2757_v0  ;;  %v881_v19 = vadd.f32 %v849_v4, %v777_v10  ;;  %v346_v50 = vadd.f32 %v2785_v39, %v307_v24  ;;  %v522_v34 = vmul.f32 %v2801_v40, %v2764_v11  ;;  %v1784_v10 = vld [vmem:[%s2068_s13 + $0xe0] sm:$0xff] }
  0x9d   : > { %v347_v56 = vadd.f32 %v2785_v39, %v308_v44  ;;  %v1236_v18 = vpack.c.bf16 %v1211_v36, %v1210_v35  ;;  %v882_v32 = vadd.f32 %v850_v54, %v778_v33  ;;  %v523_v27 = vmul.f32 %v2801_v40, %v2767_v59  ;;  %v1817_v11 = vld [vmem:[%s2068_s13 + $0xd9] sm:$0xff]  ;;  %v1818_v35 = vld [vmem:[%s2068_s13 + $0xe1] sm:$0xff] }
  0x9e   : > { %v627_v9 = vmul.f32 %v2810_v29, %v2906_v38  ;;  %v986_v1 = vadd.f32 %v954_v5, %v881_v19  ;;  %v450_v28 = vadd.f32 %v418_v43, %v346_v50  ;;  %v628_v14 = vmul.f32 %v2810_v29, %v2911_v63  ;;  %v1851_v33 = vld [vmem:[%s2068_s13 + $0xda] sm:$0xff]  ;;  %v1852_v43 = vld [vmem:[%s2068_s13 + $0xe2] sm:$0xff] }
  0x9f   : > { %v451_v4 = vadd.f32 %v419_v62, %v347_v56  ;;  %1922 = vmatprep.mubr.msk.bf16.mxu0 %vm1254_vm1, %v1236_v18  ;;  %v987_v54 = vadd.f32 %v955_v30, %v882_v32  ;;  %v731_v59 = vmul.f32 %v2820_v58, %v2916_v12  ;;  %v732_v38 = vmul.f32 %v2820_v58, %v2921_v55 }
  0xa0   : > { %v835_v5 = vmul.f32 %v2829_v17, %v2926_v46  ;;  %v1090_v24 = vadd.f32 %v1058_v41, %v986_v1  ;;  %v554_v44 = vadd.f32 %v522_v34, %v450_v28  ;;  %v836_v63 = vmul.f32 %v2829_v17, %v2931_v3 }
  0xa1   : > { %v555_v36 = vadd.f32 %v523_v27, %v451_v4  ;;  %v1091_v62 = vadd.f32 %v1059_v6, %v987_v54  ;;  %v940_v30 = vmul.f32 %v2847_v22, %v1783_v8  ;;  %v941_v19 = vmul.f32 %v2847_v22, %v1784_v10 }
  0xa2   : > { %v1044_v50 = vmul.f32 %v2859_v23, %v1817_v11  ;;  %v1194_v56 = vadd.f32 %v1162_v57, %v1090_v24  ;;  %v659_v18 = vadd.f32 %v627_v9, %v554_v44  ;;  %v1045_v46 = vmul.f32 %v2859_v23, %v1818_v35  ;;  %v1799_v44 = vld [vmem:[%s2068_s13 + $0x198] sm:$0xff] }
  0xa3   : > { %v660_v32 = vadd.f32 %v628_v14, %v555_v36  ;;  %v1195_v41 = vadd.f32 %v1163_v37, %v1091_v62  ;;  %v1148_v34 = vmul.f32 %v2874_v53, %v1851_v33  ;;  %v1149_v27 = vmul.f32 %v2874_v53, %v1852_v43 }
  0xa4   : > { %v323_v3 = vmul.f32 %v2776_v49, %v2836_v7  ;;  %v1226_v6 = vmax.f32 %v1194_v56, 0.0  ;;  %v763_v1 = vadd.f32 %v731_v59, %v659_v18  ;;  %v324_v4 = vmul.f32 %v2776_v49, %v2839_v21  ;;  %v1834_v56 = vld [vmem:[%s2068_s13 + $0x1a1] sm:$0xff] }
  0xa5   : > { %v764_v28 = vadd.f32 %v732_v38, %v660_v32  ;;  %v1227_v8 = vmax.f32 %v1195_v41, 0.0  ;;  %v434_v9 = vmul.f32 %v2791_v42, %v2842_v51  ;;  %v435_v37 = vmul.f32 %v2791_v42, %v2854_v60  ;;  %v1867_v41 = vld [vmem:[%s2068_s13 + $0x19a] sm:$0xff] }
  0xa6   : > { %v362_v57 = vadd.f32 %v2785_v39, %v323_v3  ;;  %v867_v14 = vadd.f32 %v835_v5, %v763_v1  ;;  %v363_v11 = vadd.f32 %v2785_v39, %v324_v4  ;;  %v538_v7 = vmul.f32 %v2801_v40, %v2866_v20 }
  0xa7   : > { %v868_v10 = vadd.f32 %v836_v63, %v764_v28  ;;  %v1244_v54 = vpack.c.bf16 %v1227_v8, %v1226_v6  ;;  %v539_v49 = vmul.f32 %v2801_v40, %v2869_v45  ;;  %v643_v21 = vmul.f32 %v2810_v29, %v2965_v47 }
  0xa8   : > { %v466_v59 = vadd.f32 %v434_v9, %v362_v57  ;;  %v972_v38 = vadd.f32 %v940_v30, %v867_v14  ;;  %v467_v42 = vadd.f32 %v435_v37, %v363_v11  ;;  %v644_v5 = vmul.f32 %v2810_v29, %v2968_v2  ;;  %v1800_v2 = vld [vmem:[%s2068_s13 + $0x1a0] sm:$0xff] }
  0xa9   : > { %v973_v35 = vadd.f32 %v941_v19, %v868_v10  ;;  %1938 = vmatprep.mubr.msk.bf16.mxu1 %vm1254_vm1, %v1244_v54  ;;  %v747_v20 = vmul.f32 %v2820_v58, %v2975_v52  ;;  %v748_v47 = vmul.f32 %v2820_v58, %v2978_v15  ;;  %v851_v29 = vmul.f32 %v2829_v17, %v2985_v61  ;;  %v1833_v30 = vld [vmem:[%s2068_s13 + $0x199] sm:$0xff] }
  0xaa   : > { %v570_v39 = vadd.f32 %v538_v7, %v466_v59  ;;  %v1076_v24 = vadd.f32 %v1044_v50, %v972_v38  ;;  %v571_v45 = vadd.f32 %v539_v49, %v467_v42  ;;  %v852_v62 = vmul.f32 %v2829_v17, %v2988_v48  ;;  %v3079_v11 = vld [vmem:[%s3254_s4] ss:$0 sm:$0xff] }
  0xab   : > { %v1077_v40 = vadd.f32 %v1045_v46, %v973_v35  ;;  %v956_v50 = vmul.f32 %v2847_v22, %v1799_v44  ;;  %v957_v46 = vmul.f32 %v2847_v22, %v1800_v2  ;;  %v1060_v3 = vmul.f32 %v2859_v23, %v1833_v30  ;;  %v1966_v59 = vld [vmem:[%s2068_s13 + $0x19] sm:$0xff]  ;;  %v1969_v30 = vld [vmem:[%s2068_s13 + $0xf1] sm:$0xff] }
  0xac   : > { %v675_v36 = vadd.f32 %v643_v21, %v570_v39  ;;  %v1180_v63 = vadd.f32 %v1148_v34, %v1076_v24  ;;  %v676_v43 = vadd.f32 %v644_v5, %v571_v45  ;;  %v1868_v34 = vld [vmem:[%s2068_s13 + $0x1a2] sm:$0xff]  ;;  %v1061_v1 = vmul.f32 %v2859_v23, %v1834_v56  ;;  %v1967_v35 = vld [vmem:[%s2068_s13 + $0x39] sm:$0xff] }
  0xad   : > { %v1181_v33 = vadd.f32 %v1149_v27, %v1077_v40  ;;  %v1164_v48 = vmul.f32 %v2874_v53, %v1867_v41  ;;  %v1165_v4 = vmul.f32 %v2874_v53, %v1868_v34  ;;  %v3074_v23 = vstv %s1468_s26  ;;  %v1965_v53 = vld [vmem:[%s2068_s13 + $0x31] sm:$0xff]  ;;  %v1970_v56 = vld [vmem:[%s2068_s13 + $0xd9] sm:$0xff]  ;;  %v1972_v34 = vld [vmem:[%s2068_s13 + $0xe1] sm:$0xff] }
  0xae   : > { %v779_v19 = vadd.f32 %v747_v20, %v675_v36  ;;  %v1212_v58 = vmax.f32 %v1180_v63, 0.0  ;;  %v780_v32 = vadd.f32 %v748_v47, %v676_v43  ;;  %v1472_v7 = vmul.f32 %v1965_v53, %v3074_v23  ;;  %v1968_v20 = vld [vmem:[%s2068_s13 + $0x21] sm:$0xff] }
  0xaf   : > { %v1213_v18 = vmax.f32 %v1181_v33, 0.0  ;;  %v1470_v49 = vmul.f32 %v1966_v59, %v3074_v23  ;;  %v1473_v42 = vmul.f32 %v1967_v35, %v3074_v23  ;;  %v1471_v24 = vmul.f32 %v1968_v20, %v3074_v23 }
  0xb0   : > { %v883_v61 = vadd.f32 %v851_v29, %v779_v19  ;;  %v884_v6 = vadd.f32 %v852_v62, %v780_v32  ;;  %v1488_v19 = vmul.f32 %v1969_v30, %v3074_v23 }
  0xb1   : > { %v1237_v27 = vpack.c.bf16 %v1213_v18, %v1212_v58  ;;  %v1486_v58 = vmul.f32 %v1970_v56, %v3074_v23 }
  0xb2   : > { %v988_v17 = vadd.f32 %v956_v50, %v883_v61  ;;  %v989_v28 = vadd.f32 %v957_v46, %v884_v6  ;;  %v1971_v46 = vld [vmem:[%s2068_s13 + $0xf9] sm:$0xff] }
  0xb3   : > { %1923 = vmatmul.mubr.msk.bf16.gmra.mrb[12].mxu0 %vm1254_vm1, %v1237_v27  ;;  %v1489_v41 = vmul.f32 %v1971_v46, %v3074_v23  ;;  %v1487_v27 = vmul.f32 %v1972_v34, %v3074_v23 }
  0xb4   : > { %v1092_v22 = vadd.f32 %v1060_v3, %v988_v17  ;;  %v1093_v8 = vadd.f32 %v1061_v1, %v989_v28 }
  0xb6   : > { %v1196_v57 = vadd.f32 %v1164_v48, %v1092_v22  ;;  %v1197_v9 = vadd.f32 %v1165_v4, %v1093_v8 }
  0xb8   : > { %v1228_v37 = vmax.f32 %v1196_v57, 0.0  ;;  %v1229_v14 = vmax.f32 %v1197_v9, 0.0 }
  0xba   : > { %v1245_v10 = vpack.c.bf16 %v1229_v14, %v1228_v37  ;;  %v1973_v14 = vld [vmem:[%s2068_s13 + $0x61] sm:$0xff] }
  0xbc   : > { %1939 = vmatmul.mubr.msk.bf16.gmra.mrb[12].mxu1 %vm1254_vm1, %v1245_v10  ;;  %v1476_v10 = vmul.f32 %v1973_v14, %v3074_v23  ;;  %v1981_v14 = vld [vmem:[%s2068_s13 + $0x79] sm:$0xff] }
 0x10f   : > { %v1912_v54 = vpop.f32.mrb[0].mxu0 }
 0x110   : > { %v1350_v21 = vadd.f32 %v1912_v54, %v3079_v11  ;;  %v1341_v38 = vpop.f32.mrb[1].mxu0 }
 0x111   : > { %v1342_v5 = vadd.f32 %v3079_v11, %v1341_v38  ;;  %v1913_v39 = vpop.f32.mrb[2].mxu0 }
 0x112   : > { %v1504_v40 = vadd.f32 %v1472_v7, %v1350_v21  ;;  %v1353_v45 = vadd.f32 %v1913_v39, %v3079_v11  ;;  %v1344_v47 = vpop.f32.mrb[3].mxu0  ;;  %v1974_v7 = vld [vmem:[%s2068_s13 + $0x49] sm:$0xff] }
 0x113   : > { %v1502_v44 = vadd.f32 %v1470_v49, %v1342_v5  ;;  %v1345_v36 = vadd.f32 %v3079_v11, %v1344_v47  ;;  %v1474_v54 = vmul.f32 %v1974_v7, %v3074_v23  ;;  %v1975_v21 = vld [vmem:[%s2068_s13 + $0x69] sm:$0xff]  ;;  %v1976_v5 = vld [vmem:[%s2068_s13 + $0x51] sm:$0xff] }
 0x114   : > { %v1536_v29 = vmax.f32 %v1504_v40, 0.0  ;;  %v1505_v2 = vadd.f32 %v1473_v42, %v1353_v45  ;;  %v1477_v38 = vmul.f32 %v1975_v21, %v3074_v23  ;;  %v1475_v39 = vmul.f32 %v1976_v5, %v3074_v23  ;;  %v1982_v21 = vld [vmem:[%s2068_s13 + $0x81] sm:$0xff] }
 0x115   : > { %v1534_v63 = vmax.f32 %v1502_v44, 0.0  ;;  %v1503_v33 = vadd.f32 %v1471_v24, %v1345_v36 }
 0x116   : > { %1568 = vst.msk [vmem:[%s3096_s24 + $0x10] sm:$0xff] %vm1254_vm1, %v1536_v29  ;;  %v1537_v43 = vmax.f32 %v1505_v2, 0.0 }
 0x117   : > { %1566 = vst.msk [vmem:[%s3096_s24] sm:$0xff] %vm1254_vm1, %v1534_v63  ;;  %v1535_v62 = vmax.f32 %v1503_v33, 0.0 }
 0x118   : > { %1569 = vst.msk [vmem:[%s3096_s24 + $0x18] sm:$0xff] %vm1254_vm1, %v1537_v43  ;;  %v1977_v43 = vld [vmem:[%s2068_s13 + $0x121] sm:$0xff] }
 0x119   : > { %1567 = vst.msk [vmem:[%s3096_s24 + $0x8] sm:$0xff] %vm1254_vm1, %v1535_v62  ;;  %v1492_v62 = vmul.f32 %v1977_v43, %v3074_v23  ;;  %v1497_v43 = vmul.f32 %v2700_v31, %v3074_v23 }
 0x11b   : > { %v1928_v50 = vpop.f32.mrb[0].mxu1 }
 0x11c   : > { %v1414_v18 = vadd.f32 %v1928_v50, %v3079_v11  ;;  %v1405_v32 = vpop.f32.mrb[1].mxu1 }
 0x11d   : > { %v1406_v61 = vadd.f32 %v3079_v11, %v1405_v32  ;;  %v1929_v3 = vpop.f32.mrb[2].mxu1 }
 0x11e   : > { %v1520_v6 = vadd.f32 %v1488_v19, %v1414_v18  ;;  %v1417_v1 = vadd.f32 %v1929_v3, %v3079_v11  ;;  %v1408_v17 = vpop.f32.mrb[3].mxu1  ;;  %v1978_v19 = vld [vmem:[%s2068_s13 + $0x109] sm:$0xff] }
 0x11f   : > { %v1518_v48 = vadd.f32 %v1486_v58, %v1406_v61  ;;  %v1409_v28 = vadd.f32 %v3079_v11, %v1408_v17  ;;  %v1490_v50 = vmul.f32 %v1978_v19, %v3074_v23  ;;  %v1979_v18 = vld [vmem:[%s2068_s13 + $0x129] sm:$0xff]  ;;  %v1980_v61 = vld [vmem:[%s2068_s13 + $0x111] sm:$0xff] }
 0x120   : > { %v1552_v4 = vmax.f32 %v1520_v6, 0.0  ;;  %v1521_v22 = vadd.f32 %v1489_v41, %v1417_v1  ;;  %v1493_v32 = vmul.f32 %v1979_v18, %v3074_v23  ;;  %v1491_v3 = vmul.f32 %v1980_v61, %v3074_v23 }
 0x121   : > { %v1550_v8 = vmax.f32 %v1518_v48, 0.0  ;;  %v1519_v57 = vadd.f32 %v1487_v27, %v1409_v28 }
 0x122   : > { %1584 = vst.msk [vmem:[%s3096_s24 + $0x90] sm:$0xff] %vm1254_vm1, %v1552_v4  ;;  %v1553_v9 = vmax.f32 %v1521_v22, 0.0 }
 0x123   : > { %1582 = vst.msk [vmem:[%s3096_s24 + $0x80] sm:$0xff] %vm1254_vm1, %v1550_v8  ;;  %v1551_v37 = vmax.f32 %v1519_v57, 0.0 }
 0x124   : > { %1585 = vst.msk [vmem:[%s3096_s24 + $0x98] sm:$0xff] %vm1254_vm1, %v1553_v9  ;;  %v1480_v9 = vmul.f32 %v2640_v13, %v3074_v23 }
 0x125   : > { %1583 = vst.msk [vmem:[%s3096_s24 + $0x88] sm:$0xff] %vm1254_vm1, %v1551_v37 }
 0x138   : > { %v1916_v53 = vpop.f32.mrb[4].mxu0 }
 0x139   : > { %v1366_v59 = vadd.f32 %v1916_v53, %v3079_v11  ;;  %v1357_v49 = vpop.f32.mrb[5].mxu0 }
 0x13a   : > { %v1358_v35 = vadd.f32 %v3079_v11, %v1357_v49  ;;  %v1917_v42 = vpop.f32.mrb[6].mxu0 }
 0x13b   : > { %v1508_v20 = vadd.f32 %v1476_v10, %v1366_v59  ;;  %v1369_v24 = vadd.f32 %v1917_v42, %v3079_v11  ;;  %v1360_v40 = vpop.f32.mrb[7].mxu0  ;;  %v1478_v10 = vmul.f32 %v1981_v14, %v3074_v23 }
 0x13c   : > { %v1506_v45 = vadd.f32 %v1474_v54, %v1358_v35  ;;  %v1361_v47 = vadd.f32 %v3079_v11, %v1360_v40  ;;  %v1481_v54 = vmul.f32 %v2643_v26, %v3074_v23 }
 0x13d   : > { %v1540_v44 = vmax.f32 %v1508_v20, 0.0  ;;  %v1509_v36 = vadd.f32 %v1477_v38, %v1369_v24  ;;  %v1479_v38 = vmul.f32 %v1982_v21, %v3074_v23 }
 0x13e   : > { %v1538_v29 = vmax.f32 %v1506_v45, 0.0  ;;  %v1507_v2 = vadd.f32 %v1475_v39, %v1361_v47 }
 0x13f   : > { %1572 = vst.msk [vmem:[%s3096_s24 + $0x30] sm:$0xff] %vm1254_vm1, %v1540_v44  ;;  %v1541_v63 = vmax.f32 %v1509_v36, 0.0  ;;  %v1496_v44 = vmul.f32 %v2697_v16, %v3074_v23  ;;  %v1984_v16 = vld [vmem:[%s2068_s13 + $0x141] sm:$0xff] }
 0x140   : > { %1570 = vst.msk [vmem:[%s3096_s24 + $0x20] sm:$0xff] %vm1254_vm1, %v1538_v29  ;;  %v1539_v33 = vmax.f32 %v1507_v2, 0.0  ;;  %v1983_v29 = vld [vmem:[%s2068_s13 + $0x139] sm:$0xff]  ;;  %v1495_v19 = vmul.f32 %v1984_v16, %v3074_v23 }
 0x141   : > { %1573 = vst.msk [vmem:[%s3096_s24 + $0x38] sm:$0xff] %vm1254_vm1, %v1541_v63  ;;  %v1494_v2 = vmul.f32 %v1983_v29, %v3074_v23 }
 0x142   : > { %1571 = vst.msk [vmem:[%s3096_s24 + $0x28] sm:$0xff] %vm1254_vm1, %v1539_v33  ;;  %v1932_v30 = vpop.f32.mrb[4].mxu1 }
 0x143   : > { %v1430_v56 = vadd.f32 %v1932_v30, %v3079_v11  ;;  %v1421_v58 = vpop.f32.mrb[5].mxu1 }
 0x144   : > { %v1422_v46 = vadd.f32 %v3079_v11, %v1421_v58  ;;  %v1933_v41 = vpop.f32.mrb[6].mxu1 }
 0x145   : > { %v1524_v34 = vadd.f32 %v1492_v62, %v1430_v56  ;;  %v1433_v27 = vadd.f32 %v1933_v41, %v3079_v11  ;;  %v1424_v6 = vpop.f32.mrb[7].mxu1 }
 0x146   : > { %v1522_v1 = vadd.f32 %v1490_v50, %v1422_v46  ;;  %v1425_v17 = vadd.f32 %v3079_v11, %v1424_v6 }
 0x147   : > { %v1556_v48 = vmax.f32 %v1524_v34, 0.0  ;;  %v1525_v28 = vadd.f32 %v1493_v32, %v1433_v27  ;;  %v1484_v27 = vmul.f32 %v2916_v12, %v3074_v23 }
 0x148   : > { %v1554_v4 = vmax.f32 %v1522_v1, 0.0  ;;  %v1523_v22 = vadd.f32 %v1491_v3, %v1425_v17  ;;  %v1482_v1 = vmul.f32 %v2750_v25, %v3074_v23 }
 0x149   : > { %1588 = vst.msk [vmem:[%s3096_s24 + $0xb0] sm:$0xff] %vm1254_vm1, %v1556_v48  ;;  %v1557_v8 = vmax.f32 %v1525_v28, 0.0  ;;  %v1485_v28 = vmul.f32 %v2921_v55, %v3074_v23 }
 0x14a   : > { %1586 = vst.msk [vmem:[%s3096_s24 + $0xa0] sm:$0xff] %vm1254_vm1, %v1554_v4  ;;  %v1555_v57 = vmax.f32 %v1523_v22, 0.0 }
 0x14b   : > { %1589 = vst.msk [vmem:[%s3096_s24 + $0xb8] sm:$0xff] %vm1254_vm1, %v1557_v8  ;;  %v1483_v8 = vmul.f32 %v2757_v0, %v3074_v23  ;;  %v1500_v0 = vmul.f32 %v2975_v52, %v3074_v23 }
 0x14c   : > { %1587 = vst.msk [vmem:[%s3096_s24 + $0xa8] sm:$0xff] %vm1254_vm1, %v1555_v57 }
 0x15f   : > { %v1920_v37 = vpop.f32.mrb[8].mxu0 }
 0x160   : > { %v1382_v53 = vadd.f32 %v1920_v37, %v3079_v11  ;;  %v1373_v7 = vpop.f32.mrb[9].mxu0 }
 0x161   : > { %v1374_v59 = vadd.f32 %v3079_v11, %v1373_v7  ;;  %v1921_v49 = vpop.f32.mrb[10].mxu0 }
 0x162   : > { %v1512_v13 = vadd.f32 %v1480_v9, %v1382_v53  ;;  %v1385_v35 = vadd.f32 %v1921_v49, %v3079_v11  ;;  %v1376_v42 = vpop.f32.mrb[11].mxu0  ;;  %v1498_v49 = vmul.f32 %v2842_v51, %v3074_v23 }
 0x163   : > { %v1510_v5 = vadd.f32 %v1478_v10, %v1374_v59  ;;  %v1377_v39 = vadd.f32 %v3079_v11, %v1376_v42  ;;  %v1499_v42 = vmul.f32 %v2854_v60, %v3074_v23 }
 0x164   : > { %v1544_v20 = vmax.f32 %v1512_v13, 0.0  ;;  %v1513_v24 = vadd.f32 %v1481_v54, %v1385_v35  ;;  %v1501_v13 = vmul.f32 %v2978_v15, %v3074_v23 }
 0x165   : > { %v1542_v26 = vmax.f32 %v1510_v5, 0.0  ;;  %v1511_v40 = vadd.f32 %v1479_v38, %v1377_v39 }
 0x166   : > { %1576 = vst.msk [vmem:[%s3096_s24 + $0x50] sm:$0xff] %vm1254_vm1, %v1544_v20  ;;  %v1545_v45 = vmax.f32 %v1513_v24, 0.0 }
 0x167   : > { %1574 = vst.msk [vmem:[%s3096_s24 + $0x40] sm:$0xff] %vm1254_vm1, %v1542_v26  ;;  %v1543_v47 = vmax.f32 %v1511_v40, 0.0 }
 0x168   : > { %1577 = vst.msk [vmem:[%s3096_s24 + $0x58] sm:$0xff] %vm1254_vm1, %v1545_v45  ;;  %v1936_v36 = vpop.f32.mrb[8].mxu1 }
 0x169   : > { %1575 = vst.msk [vmem:[%s3096_s24 + $0x48] sm:$0xff] %vm1254_vm1, %v1543_v47  ;;  %v1446_v63 = vadd.f32 %v1936_v36, %v3079_v11  ;;  %v1437_v33 = vpop.f32.mrb[9].mxu1 }
 0x16a   : > { %v1438_v62 = vadd.f32 %v3079_v11, %v1437_v33  ;;  %v1937_v30 = vpop.f32.mrb[10].mxu1 }
 0x16b   : > { %v1528_v50 = vadd.f32 %v1496_v44, %v1446_v63  ;;  %v1449_v56 = vadd.f32 %v1937_v30, %v3079_v11  ;;  %v1440_v58 = vpop.f32.mrb[11].mxu1 }
 0x16c   : > { %v1526_v18 = vadd.f32 %v1494_v2, %v1438_v62  ;;  %v1441_v32 = vadd.f32 %v3079_v11, %v1440_v58 }
 0x16d   : > { %v1560_v46 = vmax.f32 %v1528_v50, 0.0  ;;  %v1529_v41 = vadd.f32 %v1497_v43, %v1449_v56 }
 0x16e   : > { %v1558_v61 = vmax.f32 %v1526_v18, 0.0  ;;  %v1527_v31 = vadd.f32 %v1495_v19, %v1441_v32 }
 0x16f   : > { %1592 = vst.msk [vmem:[%s3096_s24 + $0xd0] sm:$0xff] %vm1254_vm1, %v1560_v46  ;;  %v1561_v3 = vmax.f32 %v1529_v41, 0.0 }
 0x170   : > { %1590 = vst.msk [vmem:[%s3096_s24 + $0xc0] sm:$0xff] %vm1254_vm1, %v1558_v61  ;;  %v1559_v34 = vmax.f32 %v1527_v31, 0.0 }
 0x171   : > { %1593 = vst.msk [vmem:[%s3096_s24 + $0xd8] sm:$0xff] %vm1254_vm1, %v1561_v3 }
 0x172   : > { %1591 = vst.msk [vmem:[%s3096_s24 + $0xc8] sm:$0xff] %vm1254_vm1, %v1559_v34 }
 0x186   : > { %v1924_v6 = vpop.f32.mrb[12].mxu0 }
 0x187   : > { %v1398_v17 = vadd.f32 %v1924_v6, %v3079_v11  ;;  %v1389_v48 = vpop.f32.mrb[13].mxu0 }
 0x188   : > { %v1390_v4 = vadd.f32 %v3079_v11, %v1389_v48  ;;  %v1925_v22 = vpop.f32.mrb[14].mxu0 }
 0x189   : > { %v1516_v12 = vadd.f32 %v1484_v27, %v1398_v17  ;;  %v1401_v57 = vadd.f32 %v1925_v22, %v3079_v11  ;;  %v1392_v25 = vpop.f32.mrb[15].mxu0 }
 0x18a   : > { %v1514_v9 = vadd.f32 %v1482_v1, %v1390_v4  ;;  %v1393_v37 = vadd.f32 %v3079_v11, %v1392_v25 }
 0x18b   : > { %v1548_v14 = vmax.f32 %v1516_v12, 0.0  ;;  %v1517_v10 = vadd.f32 %v1485_v28, %v1401_v57 }
 0x18c   : > { %v1546_v53 = vmax.f32 %v1514_v9, 0.0  ;;  %v1515_v7 = vadd.f32 %v1483_v8, %v1393_v37 }
 0x18d   : > { %1580 = vst.msk [vmem:[%s3096_s24 + $0x70] sm:$0xff] %vm1254_vm1, %v1548_v14  ;;  %v1549_v55 = vmax.f32 %v1517_v10, 0.0 }
 0x18e   : > { %1578 = vst.msk [vmem:[%s3096_s24 + $0x60] sm:$0xff] %vm1254_vm1, %v1546_v53  ;;  %v1547_v54 = vmax.f32 %v1515_v7, 0.0 }
 0x18f   : > { %1581 = vst.msk [vmem:[%s3096_s24 + $0x78] sm:$0xff] %vm1254_vm1, %v1549_v55  ;;  %v1940_v59 = vpop.f32.mrb[12].mxu1 }
 0x190   : > { %1579 = vst.msk [vmem:[%s3096_s24 + $0x68] sm:$0xff] %vm1254_vm1, %v1547_v54  ;;  %v1462_v21 = vadd.f32 %v1940_v59, %v3079_v11  ;;  %v1453_v38 = vpop.f32.mrb[13].mxu1 }
 0x191   : > { %v1454_v35 = vadd.f32 %v3079_v11, %v1453_v38  ;;  %v1941_v52 = vpop.f32.mrb[14].mxu1 }
 0x192   : > { %v1532_v5 = vadd.f32 %v1500_v0, %v1462_v21  ;;  %v1465_v51 = vadd.f32 %v1941_v52, %v3079_v11  ;;  %v1456_v39 = vpop.f32.mrb[15].mxu1 }
 0x193   : > { %v1530_v20 = vadd.f32 %v1498_v49, %v1454_v35  ;;  %v1457_v24 = vadd.f32 %v3079_v11, %v1456_v39 }
 0x194   : > { %v1564_v26 = vmax.f32 %v1532_v5, 0.0  ;;  %v1533_v40 = vadd.f32 %v1501_v13, %v1465_v51 }
 0x195   : > { %v1562_v45 = vmax.f32 %v1530_v20, 0.0  ;;  %v1531_v47 = vadd.f32 %v1499_v42, %v1457_v24 }
 0x196   : > { %1596 = vst.msk [vmem:[%s3096_s24 + $0xf0] sm:$0xff] %vm1254_vm1, %v1564_v26  ;;  %v1565_v15 = vmax.f32 %v1533_v40, 0.0 }
 0x197   : > { %1594 = vst.msk [vmem:[%s3096_s24 + $0xe0] sm:$0xff] %vm1254_vm1, %v1562_v45  ;;  %v1563_v44 = vmax.f32 %v1531_v47, 0.0 }
 0x198   : > { %1597 = vst.msk [vmem:[%s3096_s24 + $0xf8] sm:$0xff] %vm1254_vm1, %v1565_v15 }
 0x199   : > { %1595 = vst.msk [vmem:[%s3096_s24 + $0xe8] sm:$0xff] %vm1254_vm1, %v1563_v44 }
 0x19a PF: > { %s17_s23 = sadd.s32 1, %s1991_s23  }
 0x19b   : > { %p14_p4 = scmp.ge.s32.totalorder %s17_s23, 4  }
 0x19d   :  { %16 = sbr.rel (!%p14_p4) target bundleno = 2 (0x2), region = 84 }

</bundles_post_ra>
